<compile_context>
chip_gen: v7x
topology: tpu7x:2x2x1
jax: 0.10.0
libtpu: 0.0.40
codegen_flags: <defaults>
</compile_context>

<pallas_src>
import jax
import jax.numpy as jnp
from jax.experimental import pallas as pl
from jax.experimental.pallas import tpu as pltpu

NUM_JOINTS = 24
NUM_BETAS = 10
POSE_BASIS = 207          # 23 * 9
NUM_FEAT = NUM_BETAS + POSE_BASIS   # 217
NUM_COCO = 19

# Standard SMPL kinematic tree (parent[0] is unused, root).
PARENTS = [0, 0, 0, 0, 1, 2, 3, 4, 5, 6, 7, 8,
           9, 9, 9, 12, 13, 14, 16, 17, 18, 19, 20, 21]

_VMEM_LIMIT = 32 * 1024 * 1024  # safe on v5e/v6e (128 MiB) and v7x (64 MiB)
_PAD_MULT = 512


def _pad_and_tile(V):
    """Pad V up to a multiple of 512; pick a lane tile with >= 2 grid steps."""
    Vp = ((V + _PAD_MULT - 1) // _PAD_MULT) * _PAD_MULT
    TV = 512 if Vp >= 1024 else Vp // 2       # Vp==512 -> TV=256, nt=2
    return Vp, TV


# ----------------------------------------------------------------------------
# Pallas kernels
# ----------------------------------------------------------------------------
def _blend_kernel(bp_ref, dirs_ref, vt_ref, vp_ref):
    """Fused shape+pose blendshapes, lane-dense vertex tiles.

    Per grid step (one vertex tile of TV lanes):
      bp:   (B, 217) f32   concat(beta, pose_feature)
      dirs: (3, 217, TV) bf16  concat(shapedirs, posedirs), channel-leading
      vt:   (3, 1, TV) f32 template
    output:
      vp:   (3B, TV) f32  v_posed, row = c*B + b  (V on lanes)
    """
    bp = bp_ref[...].astype(jnp.bfloat16)                     # (B, 217)
    parts = []
    for c in range(3):                                        # 3 unrolled dots
        parts.append(
            jnp.dot(bp, dirs_ref[c], preferred_element_type=jnp.float32)
            + vt_ref[c])                                      # (B, TV) f32
    vp_ref[...] = jnp.concatenate(parts, axis=0)              # one lane-dense store


def _skin_kernel(a_ref, w_ref, vp_ref, jr_ref, verts_ref, jp_ref):
    """LBS skinning + fused cocoplus regression, fully batched matmuls.

    Per grid step (one vertex tile of TV lanes):
      a:  (B*12, 24) f32  A[:, :, :3, :] with row = b*12 + 4*r + c
      w:  (24, TV) bf16   transposed LBS weights
      vp: (3B, TV) f32    posed vertices, row = c*B + b
      jr: (TV, K) bf16    cocoplus regressor tile
    outputs:
      verts: (3B, TV) f32  row = 3*b + r  (V on lanes, one store)
      jp:    (1, 3B, K) f32 per-tile partial of joints = verts @ regressor
    """
    B = vp_ref.shape[0] // 3
    w = w_ref[...].astype(jnp.float32)                        # (24, TV)
    # Blended per-vertex 3x4 transforms for every batch at once (one MXU push).
    T = jnp.dot(a_ref[...], w, preferred_element_type=jnp.float32)  # (12B, TV)
    vp = vp_ref[...]                                          # (3B, TV)
    rows = []
    for b in range(B):                                        # B is tiny; unrolled
        vx = vp[b:b + 1]
        vy = vp[B + b:B + b + 1]
        vz = vp[2 * B + b:2 * B + b + 1]
        for r in range(3):                                    # full-lane VPU FMAs
            i = 12 * b + 4 * r
            rows.append(T[i:i + 1] * vx + T[i + 1:i + 2] * vy
                        + T[i + 2:i + 3] * vz + T[i + 3:i + 4])
    out_all = jnp.concatenate(rows, axis=0)                   # (3B, TV)
    verts_ref[...] = out_all
    # Fused joint regression: single dot, single store per tile.
    jp_ref[0] = jnp.dot(out_all, jr_ref[...].astype(jnp.float32),
                        preferred_element_type=jnp.float32)   # (3B, K)


# ----------------------------------------------------------------------------
# Pallas wrappers
# ----------------------------------------------------------------------------
def blend(bp, dirs_cl, vt_cl, tile):
    """-> v_posed (3B, Vp) f32, row = c*B + b."""
    B = bp.shape[0]
    Vp = dirs_cl.shape[2]
    nt = Vp // tile
    return pl.pallas_call(
        _blend_kernel,
        out_shape=jax.ShapeDtypeStruct((3 * B, Vp), jnp.float32),
        grid=(nt,),
        in_specs=[
            pl.BlockSpec((B, NUM_FEAT), lambda i: (0, 0)),
            pl.BlockSpec((3, NUM_FEAT, tile), lambda i: (0, 0, i)),
            pl.BlockSpec((3, 1, tile), lambda i: (0, 0, i)),
        ],
        out_specs=pl.BlockSpec((3 * B, tile), lambda i: (0, i)),
        compiler_params=pltpu.CompilerParams(
            dimension_semantics=("parallel",),
            vmem_limit_bytes=_VMEM_LIMIT),
    )(bp, dirs_cl, vt_cl)


def skin_and_regress(a_flat, weights_t, v_posed_cm, jr, tile):
    """-> verts (3B, Vp) f32 (row = 3b+r), joint partials (nt, 3B, K) f32."""
    B = a_flat.shape[0] // 12
    Vp = weights_t.shape[1]
    K = jr.shape[1]
    nt = Vp // tile
    return pl.pallas_call(
        _skin_kernel,
        out_shape=(jax.ShapeDtypeStruct((3 * B, Vp), jnp.float32),
                   jax.ShapeDtypeStruct((nt, 3 * B, K), jnp.float32)),
        grid=(nt,),
        in_specs=[
            pl.BlockSpec((12 * B, NUM_JOINTS), lambda i: (0, 0)),
            pl.BlockSpec((NUM_JOINTS, tile), lambda i: (0, i)),
            pl.BlockSpec((3 * B, tile), lambda i: (0, i)),
            pl.BlockSpec((tile, K), lambda i: (i, 0)),
        ],
        out_specs=(
            pl.BlockSpec((3 * B, tile), lambda i: (0, i)),
            pl.BlockSpec((1, 3 * B, K), lambda i: (i, 0, 0)),
        ),
        compiler_params=pltpu.CompilerParams(
            dimension_semantics=("parallel",),
            vmem_limit_bytes=_VMEM_LIMIT),
    )(a_flat, weights_t, v_posed_cm, jr)


# ----------------------------------------------------------------------------
# Small glue math (joint-count sized — kept in plain JAX)
# ----------------------------------------------------------------------------
def quat2mat(quat):
    nq = quat / jnp.linalg.norm(quat, axis=1, keepdims=True)
    w, x, y, z = nq[:, 0], nq[:, 1], nq[:, 2], nq[:, 3]
    N = quat.shape[0]
    w2, x2, y2, z2 = w * w, x * x, y * y, z * z
    wx, wy, wz = w * x, w * y, w * z
    xy, xz, yz = x * y, x * z, y * z
    rot = jnp.stack([w2 + x2 - y2 - z2, 2 * xy - 2 * wz, 2 * wy + 2 * xz,
                     2 * wz + 2 * xy, w2 - x2 + y2 - z2, 2 * yz - 2 * wx,
                     2 * xz - 2 * wy, 2 * wx + 2 * yz, w2 - x2 - y2 + z2],
                    axis=1).reshape(N, 3, 3)
    return rot


def batch_rodrigues(theta):
    # theta: (N, 3) axis-angle (epsilon convention matches original torch code)
    angle = jnp.linalg.norm(theta + 1e-8, axis=1, keepdims=True)
    normalized = theta / angle
    half = angle * 0.5
    quat = jnp.concatenate([jnp.cos(half), jnp.sin(half) * normalized], axis=1)
    return quat, quat2mat(quat)


def batch_global_rigid_transformation(Rs, Js, parents):
    # Rs: (B, 24, 3, 3), Js: (B, 24, 3)
    B = Rs.shape[0]
    Js = Js[..., None]  # (B, 24, 3, 1)

    def make_A(R, t):
        R_homo = jnp.concatenate([R, jnp.zeros((B, 1, 3), jnp.float32)], axis=1)
        t_homo = jnp.concatenate([t, jnp.ones((B, 1, 1), jnp.float32)], axis=1)
        return jnp.concatenate([R_homo, t_homo], axis=2)  # (B, 4, 4)

    results = [make_A(Rs[:, 0], Js[:, 0])]
    for i in range(1, len(parents)):
        j_here = Js[:, i] - Js[:, parents[i]]
        A_here = make_A(Rs[:, i], j_here)
        results.append(jnp.matmul(results[parents[i]], A_here))
    results = jnp.stack(results, axis=1)  # (B, 24, 4, 4)
    new_J = results[:, :, :3, 3]
    Js_w0 = jnp.concatenate([Js, jnp.zeros((B, NUM_JOINTS, 1, 1), jnp.float32)],
                            axis=2)
    init_bone = jnp.matmul(results, Js_w0)  # (B, 24, 4, 1)
    init_bone = jnp.pad(init_bone, ((0, 0), (0, 0), (0, 0), (3, 0)))
    A = results - init_bone
    return new_J, A


# ----------------------------------------------------------------------------
# SMPL forward (Pallas hot path) and pure-JAX reference
# ----------------------------------------------------------------------------
def smpl_forward_pallas(beta, theta, kp):
    B = beta.shape[0]
    V = kp["num_verts"]
    tile = kp["tile"]

    Rs = batch_rodrigues(theta.reshape(-1, 3))[1].reshape(B, NUM_JOINTS, 3, 3)
    pose_feature = (Rs[:, 1:] - jnp.eye(3, dtype=jnp.float32)).reshape(B, POSE_BASIS)
    bp = jnp.concatenate([beta, pose_feature], axis=1)            # (B, 217)

    # Blendshapes in one Pallas kernel; v_posed stays lane-dense (3B, Vp).
    v_posed_cm = blend(bp, kp["dirs_cl"], kp["v_template_cl"], tile)

    # Algebraically hoisted J regression (tiny glue matmul instead of a fused
    # V*24 HBM stream in the blend kernel). Uses v_shaped, as in the reference.
    J = jnp.einsum("bn,cnj->bjc", beta, kp["sd_J"]) + kp["vt_J"].T[None]  # (B,24,3)

    _, A = batch_global_rigid_transformation(Rs, J, kp["parents"])
    # Drop the homogeneous bottom row; row = b*12 + 4*r + c.
    a_flat = jnp.transpose(A[:, :, :3, :], (0, 2, 3, 1)).reshape(B * 12, NUM_JOINTS)

    # Skinning + fused cocoplus regression (partials per vertex tile).
    verts_flat, jp = skin_and_regress(
        a_flat, kp["weights_t"], v_posed_cm, kp["joint_regressor"], tile)

    joints = jnp.transpose(jnp.sum(jp, axis=0).reshape(B, 3, -1), (0, 2, 1))  # (B,K,3)
    verts = jnp.transpose(verts_flat.reshape(B, 3, -1), (0, 2, 1))[:, :V, :]  # (B,V,3)
    return verts, joints, Rs


def smpl_forward_reference(beta, theta, params):
    B = beta.shape[0]
    V = params["v_template"].shape[0]
    v_shaped = (beta @ params["shapedirs"]).reshape(B, V, 3) + params["v_template"]
    J = jnp.stack([v_shaped[:, :, c] @ params["J_regressor"] for c in range(3)],
                  axis=2)
    Rs = batch_rodrigues(theta.reshape(-1, 3))[1].reshape(B, NUM_JOINTS, 3, 3)
    pose_feature = (Rs[:, 1:] - jnp.eye(3, dtype=jnp.float32)).reshape(B, POSE_BASIS)
    v_posed = (pose_feature @ params["posedirs"]).reshape(B, V, 3) + v_shaped
    _, A = batch_global_rigid_transformation(Rs, J, params["parents"])
    T = jnp.einsum("vj,bjk->bvk", params["weights"],
                   A.reshape(B, NUM_JOINTS, 16)).reshape(B, V, 4, 4)
    homo = jnp.concatenate([v_posed, jnp.ones((B, V, 1), jnp.float32)], axis=2)
    v_homo = jnp.matmul(T, homo[..., None])
    verts = v_homo[:, :, :3, 0]
    joints = jnp.stack([verts[:, :, c] @ params["joint_regressor"]
                        for c in range(3)], axis=2)
    return verts, joints, Rs


# ----------------------------------------------------------------------------
# Deterministic synthetic parameter init (mirrors the buffer shapes in __init__)
# and one-time conversion to the kernel-friendly, padded, lane-dense layout.
# ----------------------------------------------------------------------------
def init_smpl_params(key, num_verts=300, joint_type="cocoplus"):
    V = num_verts
    ks = jax.random.split(key, 6)
    v_template = jax.random.normal(ks[0], (V, 3), jnp.float32)
    # b_center=True: stand-in for center_pts_np_array (init-time centering)
    v_template = v_template - jnp.mean(v_template, axis=0, keepdims=True)
    # Torch-style flat layouts: column = v*3 + c (matches .view(-1, V, 3)).
    shapedirs = 0.03 * jax.random.normal(ks[1], (NUM_BETAS, V * 3), jnp.float32)
    posedirs = 0.01 * jax.random.normal(ks[2], (POSE_BASIS, V * 3), jnp.float32)
    jr = jax.random.uniform(ks[3], (V, NUM_JOINTS), jnp.float32)
    J_regressor = jr / jnp.sum(jr, axis=0, keepdims=True)
    w = jax.random.uniform(ks[4], (V, NUM_JOINTS), jnp.float32)
    weights = jax.nn.softmax(4.0 * w, axis=1)
    cr = jax.random.uniform(ks[5], (V, NUM_COCO), jnp.float32)
    joint_regressor = cr / jnp.sum(cr, axis=0, keepdims=True)
    if joint_type == "lsp":
        joint_regressor = joint_regressor[:, :14]
    return dict(v_template=v_template, shapedirs=shapedirs, posedirs=posedirs,
                J_regressor=J_regressor, weights=weights,
                joint_regressor=joint_regressor, parents=PARENTS)


def prepare_kernel_params(params):
    """One-time conversion: pad V, concat dirs, bf16 streams, hoisted J-reg."""
    V = params["v_template"].shape[0]
    Vp, tile = _pad_and_tile(V)
    padV = Vp - V

    sd = params["shapedirs"].reshape(NUM_BETAS, V, 3)
    pd = params["posedirs"].reshape(POSE_BASIS, V, 3)
    dirs = jnp.concatenate([sd, pd], axis=0)                       # (217, V, 3)
    dirs = jnp.pad(dirs, ((0, 0), (0, padV), (0, 0)))              # zero pad rows
    dirs_cl = jnp.transpose(dirs, (2, 0, 1)).astype(jnp.bfloat16)  # (3, 217, Vp)

    vt_p = jnp.pad(params["v_template"], ((0, padV), (0, 0)))      # (Vp, 3)
    v_template_cl = jnp.transpose(vt_p, (1, 0))[:, None, :]        # (3, 1, Vp) f32

    weights_t = jnp.transpose(
        jnp.pad(params["weights"], ((0, padV), (0, 0))), (1, 0)
    ).astype(jnp.bfloat16)                                         # (24, Vp) bf16
    joint_regressor = jnp.pad(
        params["joint_regressor"], ((0, padV), (0, 0))
    ).astype(jnp.bfloat16)                                         # (Vp, K) bf16

    # Hoisted J regression (unpadded, full f32 precision):
    #   J_c = beta @ (shapedirs_c @ Jreg) + v_template_c @ Jreg
    sd_J = jnp.stack([sd[:, :, c] @ params["J_regressor"] for c in range(3)],
                     axis=0)                                        # (3, 10, 24)
    vt_J = jnp.stack([params["v_template"][:, c] @ params["J_regressor"]
                      for c in range(3)], axis=0)                   # (3, 24)

    return dict(
        num_verts=V, padded_verts=Vp, tile=tile, parents=params["parents"],
        dirs_cl=dirs_cl, v_template_cl=v_template_cl,
        weights_t=weights_t, joint_regressor=joint_regressor,
        sd_J=sd_J, vt_J=vt_J,
    )


if __name__ == "__main__":
    key = jax.random.PRNGKey(0)
    k_param, k_beta, k_theta = jax.random.split(key, 3)

    # Small toy shapes; V deliberately not a multiple of 128 to exercise the
    # padding + multi-tile (nt=2) path.
    B, V = 2, 300
    params = init_smpl_params(k_param, num_verts=V, joint_type="cocoplus")
    kparams = prepare_kernel_params(params)
    beta = jax.random.normal(k_beta, (B, NUM_BETAS), jnp.float32)
    theta = 0.2 * jax.random.normal(k_theta, (B, NUM_JOINTS * 3), jnp.float32)

    fwd = jax.jit(lambda b, t: smpl_forward_pallas(b, t, kparams))
    verts, joints, Rs = fwd(beta, theta)
    jax.block_until_ready((verts, joints, Rs))

    verts_r, joints_r, Rs_r = smpl_forward_reference(beta, theta, params)
    assert verts.shape == (B, V, 3) and joints.shape == (B, NUM_COCO, 3)
    assert Rs.shape == (B, NUM_JOINTS, 3, 3)
    # 1e-2 tolerance covers bf16 storage of dirs/weights/regressor vs f32 ref.
    assert jnp.allclose(verts, verts_r, atol=1e-2, rtol=1e-2)
    assert jnp.allclose(joints, joints_r, atol=1e-2, rtol=1e-2)
    assert jnp.allclose(Rs, Rs_r, atol=1e-5, rtol=1e-5)

    print("KERNEL_OK")
</pallas_src>

<mosaic_0001>
module attributes {stable_mosaic.version = 11 : i64} {
  func.func @_blend_kernel(%arg0: i32, %arg1: memref<2x217xf32, #tpu.memory_space<vmem>>, %arg2: memref<3x217x256xbf16, #tpu.memory_space<vmem>>, %arg3: memref<3x1x256xf32, #tpu.memory_space<vmem>>, %arg4: memref<6x256xf32, #tpu.memory_space<vmem>>) attributes {dimension_semantics = [#tpu.dimension_semantics<parallel>], iteration_bounds = array<i64: 2>, scalar_prefetch = 0 : i64, scratch_operands = 0 : i64, tpu.core_type = #tpu.core_type<tc>, window_params = [{pipeline_mode = #tpu.pipeline_mode<synchronous>, transform_indices = @transform_0, window_bounds = array<i64: 2, 217>}, {transform_indices = @transform_1, window_bounds = array<i64: 3, 217, 256>}, {transform_indices = @transform_2, window_bounds = array<i64: 3, 1, 256>}, {transform_indices = @transform_3, window_bounds = array<i64: 6, 256>}]} {
    %c0 = arith.constant 0 : index
    %c0_0 = arith.constant 0 : index
    %0 = vector.load %arg1[%c0, %c0_0] : memref<2x217xf32, #tpu.memory_space<vmem>>, vector<2x217xf32>
    %1 = arith.truncf %0 : vector<2x217xf32> to vector<2x217xbf16>
    %c0_1 = arith.constant 0 : index
    %c0_2 = arith.constant 0 : index
    %c0_3 = arith.constant 0 : index
    %2 = vector.load %arg2[%c0_1, %c0_2, %c0_3] : memref<3x217x256xbf16, #tpu.memory_space<vmem>>, vector<1x217x256xbf16>
    %3 = vector.shape_cast %2 : vector<1x217x256xbf16> to vector<217x256xbf16>
    %cst = arith.constant dense<0.000000e+00> : vector<2x256xf32>
    %4 = tpu.matmul %1, %3, %cst {dimension_numbers = #tpu.dot_dimension_numbers<[1], [0], [0], [1], [0, 0, 1, 1], [], []>} : vector<2x217xbf16>, vector<217x256xbf16>, vector<2x256xf32> -> vector<2x256xf32>
    %c0_4 = arith.constant 0 : index
    %c0_5 = arith.constant 0 : index
    %c0_6 = arith.constant 0 : index
    %5 = vector.load %arg3[%c0_4, %c0_5, %c0_6] : memref<3x1x256xf32, #tpu.memory_space<vmem>>, vector<1x1x256xf32>
    %6 = vector.shape_cast %5 : vector<1x1x256xf32> to vector<1x256xf32>
    %7 = vector.broadcast %6 : vector<1x256xf32> to vector<2x256xf32>
    %8 = arith.addf %4, %7 : vector<2x256xf32>
    %c1 = arith.constant 1 : index
    %c0_7 = arith.constant 0 : index
    %c0_8 = arith.constant 0 : index
    %9 = vector.load %arg2[%c1, %c0_7, %c0_8] : memref<3x217x256xbf16, #tpu.memory_space<vmem>>, vector<1x217x256xbf16>
    %10 = vector.shape_cast %9 : vector<1x217x256xbf16> to vector<217x256xbf16>
    %cst_9 = arith.constant dense<0.000000e+00> : vector<2x256xf32>
    %11 = tpu.matmul %1, %10, %cst_9 {dimension_numbers = #tpu.dot_dimension_numbers<[1], [0], [0], [1], [0, 0, 1, 1], [], []>} : vector<2x217xbf16>, vector<217x256xbf16>, vector<2x256xf32> -> vector<2x256xf32>
    %c1_10 = arith.constant 1 : index
    %c0_11 = arith.constant 0 : index
    %c0_12 = arith.constant 0 : index
    %12 = vector.load %arg3[%c1_10, %c0_11, %c0_12] : memref<3x1x256xf32, #tpu.memory_space<vmem>>, vector<1x1x256xf32>
    %13 = vector.shape_cast %12 : vector<1x1x256xf32> to vector<1x256xf32>
    %14 = vector.broadcast %13 : vector<1x256xf32> to vector<2x256xf32>
    %15 = arith.addf %11, %14 : vector<2x256xf32>
    %c2 = arith.constant 2 : index
    %c0_13 = arith.constant 0 : index
    %c0_14 = arith.constant 0 : index
    %16 = vector.load %arg2[%c2, %c0_13, %c0_14] : memref<3x217x256xbf16, #tpu.memory_space<vmem>>, vector<1x217x256xbf16>
    %17 = vector.shape_cast %16 : vector<1x217x256xbf16> to vector<217x256xbf16>
    %cst_15 = arith.constant dense<0.000000e+00> : vector<2x256xf32>
    %18 = tpu.matmul %1, %17, %cst_15 {dimension_numbers = #tpu.dot_dimension_numbers<[1], [0], [0], [1], [0, 0, 1, 1], [], []>} : vector<2x217xbf16>, vector<217x256xbf16>, vector<2x256xf32> -> vector<2x256xf32>
    %c2_16 = arith.constant 2 : index
    %c0_17 = arith.constant 0 : index
    %c0_18 = arith.constant 0 : index
    %19 = vector.load %arg3[%c2_16, %c0_17, %c0_18] : memref<3x1x256xf32, #tpu.memory_space<vmem>>, vector<1x1x256xf32>
    %20 = vector.shape_cast %19 : vector<1x1x256xf32> to vector<1x256xf32>
    %21 = vector.broadcast %20 : vector<1x256xf32> to vector<2x256xf32>
    %22 = arith.addf %18, %21 : vector<2x256xf32>
    %23 = tpu.concatenate %8, %15, %22 in 0 : vector<2x256xf32>, vector<2x256xf32>, vector<2x256xf32> -> vector<6x256xf32>
    %c0_19 = arith.constant 0 : index
    %c0_20 = arith.constant 0 : index
    %24 = vector.load %arg4[%c0_19, %c0_20] : memref<6x256xf32, #tpu.memory_space<vmem>>, vector<6x256xf32>
    tpu.vector_store %arg4[%c0_19, %c0_20], %23 {strides = array<i32>} : memref<6x256xf32, #tpu.memory_space<vmem>>, vector<6x256xf32>,
    return
  }
  func.func @transform_0(%arg0: i32) -> (i32, i32) {
    %c0_i32 = arith.constant 0 : i32
    %c0_i32_0 = arith.constant 0 : i32
    %c0_i32_1 = arith.constant 0 : i32
    return %c0_i32, %c0_i32_0 : i32, i32
  }
  func.func @transform_1(%arg0: i32) -> (i32, i32, i32) {
    %c0_i32 = arith.constant 0 : i32
    %c0_i32_0 = arith.constant 0 : i32
    %c0_i32_1 = arith.constant 0 : i32
    return %c0_i32, %c0_i32_0, %arg0 : i32, i32, i32
  }
  func.func @transform_2(%arg0: i32) -> (i32, i32, i32) {
    %c0_i32 = arith.constant 0 : i32
    %c0_i32_0 = arith.constant 0 : i32
    %c0_i32_1 = arith.constant 0 : i32
    return %c0_i32, %c0_i32_0, %arg0 : i32, i32, i32
  }
  func.func @transform_3(%arg0: i32) -> (i32, i32) {
    %c0_i32 = arith.constant 0 : i32
    %c0_i32_0 = arith.constant 0 : i32
    return %c0_i32, %arg0 : i32, i32
  }
}

module attributes {stable_mosaic.version = 11 : i64} {
  func.func @_skin_kernel(%arg0: i32, %arg1: memref<24x24xf32, #tpu.memory_space<vmem>>, %arg2: memref<24x256xbf16, #tpu.memory_space<vmem>>, %arg3: memref<6x256xf32, #tpu.memory_space<vmem>>, %arg4: memref<256x19xbf16, #tpu.memory_space<vmem>>, %arg5: memref<6x256xf32, #tpu.memory_space<vmem>>, %arg6: memref<1x6x19xf32, #tpu.memory_space<vmem>>) attributes {dimension_semantics = [#tpu.dimension_semantics<parallel>], iteration_bounds = array<i64: 2>, scalar_prefetch = 0 : i64, scratch_operands = 0 : i64, tpu.core_type = #tpu.core_type<tc>, window_params = [{pipeline_mode = #tpu.pipeline_mode<synchronous>, transform_indices = @transform_0, window_bounds = array<i64: 24, 24>}, {transform_indices = @transform_1, window_bounds = array<i64: 24, 256>}, {transform_indices = @transform_2, window_bounds = array<i64: 6, 256>}, {transform_indices = @transform_3, window_bounds = array<i64: 256, 19>}, {transform_indices = @transform_4, window_bounds = array<i64: 6, 256>}, {transform_indices = @transform_5, window_bounds = array<i64: 1, 6, 19>}]} {
    %c0 = arith.constant 0 : index
    %c0_0 = arith.constant 0 : index
    %0 = vector.load %arg2[%c0, %c0_0] : memref<24x256xbf16, #tpu.memory_space<vmem>>, vector<24x256xbf16>
    %1 = arith.extf %0 : vector<24x256xbf16> to vector<24x256xf32>
    %c0_1 = arith.constant 0 : index
    %c0_2 = arith.constant 0 : index
    %2 = vector.load %arg1[%c0_1, %c0_2] : memref<24x24xf32, #tpu.memory_space<vmem>>, vector<24x24xf32>
    %cst = arith.constant dense<0.000000e+00> : vector<24x256xf32>
    %3 = tpu.matmul %2, %1, %cst {dimension_numbers = #tpu.dot_dimension_numbers<[1], [0], [0], [1], [0, 0, 1, 1], [], []>} : vector<24x24xf32>, vector<24x256xf32>, vector<24x256xf32> -> vector<24x256xf32>
    %c0_3 = arith.constant 0 : index
    %c0_4 = arith.constant 0 : index
    %4 = vector.load %arg3[%c0_3, %c0_4] : memref<6x256xf32, #tpu.memory_space<vmem>>, vector<6x256xf32>
    %5 = vector.extract_strided_slice %4 {offsets = [0, 0], sizes = [1, 256], strides = [1, 1]} : vector<6x256xf32> to vector<1x256xf32>
    %6 = vector.extract_strided_slice %4 {offsets = [2, 0], sizes = [1, 256], strides = [1, 1]} : vector<6x256xf32> to vector<1x256xf32>
    %7 = vector.extract_strided_slice %4 {offsets = [4, 0], sizes = [1, 256], strides = [1, 1]} : vector<6x256xf32> to vector<1x256xf32>
    %8 = vector.extract_strided_slice %3 {offsets = [0, 0], sizes = [1, 256], strides = [1, 1]} : vector<24x256xf32> to vector<1x256xf32>
    %9 = arith.mulf %8, %5 : vector<1x256xf32>
    %10 = vector.extract_strided_slice %3 {offsets = [1, 0], sizes = [1, 256], strides = [1, 1]} : vector<24x256xf32> to vector<1x256xf32>
    %11 = arith.mulf %10, %6 : vector<1x256xf32>
    %12 = arith.addf %9, %11 : vector<1x256xf32>
    %13 = vector.extract_strided_slice %3 {offsets = [2, 0], sizes = [1, 256], strides = [1, 1]} : vector<24x256xf32> to vector<1x256xf32>
    %14 = arith.mulf %13, %7 : vector<1x256xf32>
    %15 = arith.addf %12, %14 : vector<1x256xf32>
    %16 = vector.extract_strided_slice %3 {offsets = [3, 0], sizes = [1, 256], strides = [1, 1]} : vector<24x256xf32> to vector<1x256xf32>
    %17 = arith.addf %15, %16 : vector<1x256xf32>
    %18 = vector.extract_strided_slice %3 {offsets = [4, 0], sizes = [1, 256], strides = [1, 1]} : vector<24x256xf32> to vector<1x256xf32>
    %19 = arith.mulf %18, %5 : vector<1x256xf32>
    %20 = vector.extract_strided_slice %3 {offsets = [5, 0], sizes = [1, 256], strides = [1, 1]} : vector<24x256xf32> to vector<1x256xf32>
    %21 = arith.mulf %20, %6 : vector<1x256xf32>
    %22 = arith.addf %19, %21 : vector<1x256xf32>
    %23 = vector.extract_strided_slice %3 {offsets = [6, 0], sizes = [1, 256], strides = [1, 1]} : vector<24x256xf32> to vector<1x256xf32>
    %24 = arith.mulf %23, %7 : vector<1x256xf32>
    %25 = arith.addf %22, %24 : vector<1x256xf32>
    %26 = vector.extract_strided_slice %3 {offsets = [7, 0], sizes = [1, 256], strides = [1, 1]} : vector<24x256xf32> to vector<1x256xf32>
    %27 = arith.addf %25, %26 : vector<1x256xf32>
    %28 = vector.extract_strided_slice %3 {offsets = [8, 0], sizes = [1, 256], strides = [1, 1]} : vector<24x256xf32> to vector<1x256xf32>
    %29 = arith.mulf %28, %5 : vector<1x256xf32>
    %30 = vector.extract_strided_slice %3 {offsets = [9, 0], sizes = [1, 256], strides = [1, 1]} : vector<24x256xf32> to vector<1x256xf32>
    %31 = arith.mulf %30, %6 : vector<1x256xf32>
    %32 = arith.addf %29, %31 : vector<1x256xf32>
    %33 = vector.extract_strided_slice %3 {offsets = [10, 0], sizes = [1, 256], strides = [1, 1]} : vector<24x256xf32> to vector<1x256xf32>
    %34 = arith.mulf %33, %7 : vector<1x256xf32>
    %35 = arith.addf %32, %34 : vector<1x256xf32>
    %36 = vector.extract_strided_slice %3 {offsets = [11, 0], sizes = [1, 256], strides = [1, 1]} : vector<24x256xf32> to vector<1x256xf32>
    %37 = arith.addf %35, %36 : vector<1x256xf32>
    %38 = vector.extract_strided_slice %4 {offsets = [1, 0], sizes = [1, 256], strides = [1, 1]} : vector<6x256xf32> to vector<1x256xf32>
    %39 = vector.extract_strided_slice %4 {offsets = [3, 0], sizes = [1, 256], strides = [1, 1]} : vector<6x256xf32> to vector<1x256xf32>
    %40 = vector.extract_strided_slice %4 {offsets = [5, 0], sizes = [1, 256], strides = [1, 1]} : vector<6x256xf32> to vector<1x256xf32>
    %41 = vector.extract_strided_slice %3 {offsets = [12, 0], sizes = [1, 256], strides = [1, 1]} : vector<24x256xf32> to vector<1x256xf32>
    %42 = arith.mulf %41, %38 : vector<1x256xf32>
    %43 = vector.extract_strided_slice %3 {offsets = [13, 0], sizes = [1, 256], strides = [1, 1]} : vector<24x256xf32> to vector<1x256xf32>
    %44 = arith.mulf %43, %39 : vector<1x256xf32>
    %45 = arith.addf %42, %44 : vector<1x256xf32>
    %46 = vector.extract_strided_slice %3 {offsets = [14, 0], sizes = [1, 256], strides = [1, 1]} : vector<24x256xf32> to vector<1x256xf32>
    %47 = arith.mulf %46, %40 : vector<1x256xf32>
    %48 = arith.addf %45, %47 : vector<1x256xf32>
    %49 = vector.extract_strided_slice %3 {offsets = [15, 0], sizes = [1, 256], strides = [1, 1]} : vector<24x256xf32> to vector<1x256xf32>
    %50 = arith.addf %48, %49 : vector<1x256xf32>
    %51 = vector.extract_strided_slice %3 {offsets = [16, 0], sizes = [1, 256], strides = [1, 1]} : vector<24x256xf32> to vector<1x256xf32>
    %52 = arith.mulf %51, %38 : vector<1x256xf32>
    %53 = vector.extract_strided_slice %3 {offsets = [17, 0], sizes = [1, 256], strides = [1, 1]} : vector<24x256xf32> to vector<1x256xf32>
    %54 = arith.mulf %53, %39 : vector<1x256xf32>
    %55 = arith.addf %52, %54 : vector<1x256xf32>
    %56 = vector.extract_strided_slice %3 {offsets = [18, 0], sizes = [1, 256], strides = [1, 1]} : vector<24x256xf32> to vector<1x256xf32>
    %57 = arith.mulf %56, %40 : vector<1x256xf32>
    %58 = arith.addf %55, %57 : vector<1x256xf32>
    %59 = vector.extract_strided_slice %3 {offsets = [19, 0], sizes = [1, 256], strides = [1, 1]} : vector<24x256xf32> to vector<1x256xf32>
    %60 = arith.addf %58, %59 : vector<1x256xf32>
    %61 = vector.extract_strided_slice %3 {offsets = [20, 0], sizes = [1, 256], strides = [1, 1]} : vector<24x256xf32> to vector<1x256xf32>
    %62 = arith.mulf %61, %38 : vector<1x256xf32>
    %63 = vector.extract_strided_slice %3 {offsets = [21, 0], sizes = [1, 256], strides = [1, 1]} : vector<24x256xf32> to vector<1x256xf32>
    %64 = arith.mulf %63, %39 : vector<1x256xf32>
    %65 = arith.addf %62, %64 : vector<1x256xf32>
    %66 = vector.extract_strided_slice %3 {offsets = [22, 0], sizes = [1, 256], strides = [1, 1]} : vector<24x256xf32> to vector<1x256xf32>
    %67 = arith.mulf %66, %40 : vector<1x256xf32>
    %68 = arith.addf %65, %67 : vector<1x256xf32>
    %69 = vector.extract_strided_slice %3 {offsets = [23, 0], sizes = [1, 256], strides = [1, 1]} : vector<24x256xf32> to vector<1x256xf32>
    %70 = arith.addf %68, %69 : vector<1x256xf32>
    %71 = tpu.concatenate %17, %27, %37, %50, %60, %70 in 0 : vector<1x256xf32>, vector<1x256xf32>, vector<1x256xf32>, vector<1x256xf32>, vector<1x256xf32>, vector<1x256xf32> -> vector<6x256xf32>
    %c0_5 = arith.constant 0 : index
    %c0_6 = arith.constant 0 : index
    %72 = vector.load %arg5[%c0_5, %c0_6] : memref<6x256xf32, #tpu.memory_space<vmem>>, vector<6x256xf32>
    tpu.vector_store %arg5[%c0_5, %c0_6], %71 {strides = array<i32>} : memref<6x256xf32, #tpu.memory_space<vmem>>, vector<6x256xf32>,
    %c0_7 = arith.constant 0 : index
    %c0_8 = arith.constant 0 : index
    %73 = vector.load %arg4[%c0_7, %c0_8] : memref<256x19xbf16, #tpu.memory_space<vmem>>, vector<256x19xbf16>
    %74 = arith.extf %73 : vector<256x19xbf16> to vector<256x19xf32>
    %cst_9 = arith.constant dense<0.000000e+00> : vector<6x19xf32>
    %75 = tpu.matmul %71, %74, %cst_9 {dimension_numbers = #tpu.dot_dimension_numbers<[1], [0], [0], [1], [0, 0, 1, 1], [], []>} : vector<6x256xf32>, vector<256x19xf32>, vector<6x19xf32> -> vector<6x19xf32>
    %c0_10 = arith.constant 0 : index
    %c0_11 = arith.constant 0 : index
    %c0_12 = arith.constant 0 : index
    %76 = vector.load %arg6[%c0_10, %c0_11, %c0_12] : memref<1x6x19xf32, #tpu.memory_space<vmem>>, vector<1x6x19xf32>
    %77 = vector.shape_cast %76 : vector<1x6x19xf32> to vector<6x19xf32>
    %78 = vector.shape_cast %75 : vector<6x19xf32> to vector<1x6x19xf32>
    tpu.vector_store %arg6[%c0_10, %c0_11, %c0_12], %78 {strides = array<i32>} : memref<1x6x19xf32, #tpu.memory_space<vmem>>, vector<1x6x19xf32>,
    return
  }
  func.func @transform_0(%arg0: i32) -> (i32, i32) {
    %c0_i32 = arith.constant 0 : i32
    %c0_i32_0 = arith.constant 0 : i32
    %c0_i32_1 = arith.constant 0 : i32
    return %c0_i32, %c0_i32_0 : i32, i32
  }
  func.func @transform_1(%arg0: i32) -> (i32, i32) {
    %c0_i32 = arith.constant 0 : i32
    %c0_i32_0 = arith.constant 0 : i32
    return %c0_i32, %arg0 : i32, i32
  }
  func.func @transform_2(%arg0: i32) -> (i32, i32) {
    %c0_i32 = arith.constant 0 : i32
    %c0_i32_0 = arith.constant 0 : i32
    return %c0_i32, %arg0 : i32, i32
  }
  func.func @transform_3(%arg0: i32) -> (i32, i32) {
    %c0_i32 = arith.constant 0 : i32
    %c0_i32_0 = arith.constant 0 : i32
    return %arg0, %c0_i32 : i32, i32
  }
  func.func @transform_4(%arg0: i32) -> (i32, i32) {
    %c0_i32 = arith.constant 0 : i32
    %c0_i32_0 = arith.constant 0 : i32
    return %c0_i32, %arg0 : i32, i32
  }
  func.func @transform_5(%arg0: i32) -> (i32, i32, i32) {
    %c0_i32 = arith.constant 0 : i32
    %c0_i32_0 = arith.constant 0 : i32
    %c0_i32_1 = arith.constant 0 : i32
    return %arg0, %c0_i32, %c0_i32_0 : i32, i32, i32
  }
}

</mosaic_0001>

<bundles_post_ra>
// kernel: _lambda_.2
= control target key start
LH: loop header
LB: loop body
LE: loop exit
PB: predicated region body
PF: predicated region fallthrough
CT: control target
= control target key end

     0   :  { %s1762_s12 = smov 0   ;;  %s1764_s13 = smov 0   ;;  %s2117_s0 = inlined_call_operand.vmem [shape: f32[2,217], index: 0, kind: input, shape index: {}]   ;;  %s2118_s1 = inlined_call_operand.vmem [shape: bf16[3,217,512], index: 1, kind: input, shape index: {}]   ;;  %s2119_s2 = inlined_call_operand.vmem [shape: f32[3,1,512], index: 2, kind: input, shape index: {}]   ;;  %s2120_s3 = inlined_call_operand.vmem [shape: f32[6,512], index: 3, kind: output, shape index: {}]  }
   0x1   :  { %s1766_s14 = smov 0  }
   0x2 LB: > { %s1403_s15 = sadd.s32 4294967295, %s1739_s14   ;;  %s1779_s16 = sadd.s32 1, %s1739_s14   ;;  %s1739_s14 = sphi %s1766_s14, %s2124_s14   ;;  %s1735_s13 = sphi %s1764_s13, %s2123_s13   ;;  %s1731_s12 = sphi %s1762_s12, %s2122_s12  }
   0x3   : > { %s38_s17 = ssub.s32 %s1739_s14, %s1779_s16  ;;  %s41_s18 = sadd.s32 1, %s1735_s13 }
   0x4   : > { %p39_p0 = scmp.eq.s32.totalorder %s38_s17, 0  ;;  %p48_p1 = scmp.ne.s32.totalorder %s1735_s13, %s1731_s12 }
   0x5   : > { %p49_p2 = scmp.eq.s32.totalorder %s1739_s14, 0  ;;  %p1406_p4 = scmp.ge.s32.totalorder %s1739_s14, 2 }
   0x6   : > { %s1788_s19 = scalar_select %p39_p0, %s1735_s13, %s41_s18  }
   0x7   : > { %p1790_p3 = por %p49_p2, %p48_p1  ;;  %129 = sbr.rel (%p1406_p4) target bundleno = 67 (0x43), region = 20 }
   0xe   : > { %132 = sbr.rel (!%p1790_p3) target bundleno = 60 (0x3c), region = 24  ;;  %s134_s21 = sand.u32 (%p1790_p3), 1, %s1735_s13  }
   0xf   : > { %s1561_s22 = sshll.u32 (%p1790_p3), %s1739_s14, 3  ;;  %s1562_s23 = smul.u32 (%p1790_p3), 672, %s134_s21 }
  0x10   : > { %s1802_s26 = scalar_lea.vmem (%p1790_p3), %s2118_s1, %s1561_s22 }
  0x11   : > { %v333_v0 = vld [vmem:[%s1802_s26] sm:$0xff] (%p1790_p3)  ;;  %v335_v1 = vld [vmem:[%s1802_s26 + $0x10] sm:$0xff] (%p1790_p3)  ;;  %s1810_s27 = scalar_lea.vmem (%p1790_p3), [#allocation2], %s1562_s23 }
  0x12   : > { %v337_v2 = vld [vmem:[%s1802_s26 + $0x20] sm:$0xff] (%p1790_p3)  ;;  %v339_v3 = vld [vmem:[%s1802_s26 + $0x30] sm:$0xff] (%p1790_p3)  ;;  %334 = vst [vmem:[%s1810_s27] sm:$0xff] (%p1790_p3), %v333_v0  ;;  %336 = vst [vmem:[%s1810_s27 + $0x8] sm:$0xff] (%p1790_p3), %v335_v1 }
  0x13   : > { %v341_v4 = vld [vmem:[%s1802_s26 + $0x40] sm:$0xff] (%p1790_p3)  ;;  %v343_v5 = vld [vmem:[%s1802_s26 + $0x50] sm:$0xff] (%p1790_p3)  ;;  %338 = vst [vmem:[%s1810_s27 + $0x10] sm:$0xff] (%p1790_p3), %v337_v2  ;;  %340 = vst [vmem:[%s1810_s27 + $0x18] sm:$0xff] (%p1790_p3), %v339_v3 }
  0x14   : > { %342 = vst [vmem:[%s1810_s27 + $0x20] sm:$0xff] (%p1790_p3), %v341_v4  ;;  %344 = vst [vmem:[%s1810_s27 + $0x28] sm:$0xff] (%p1790_p3), %v343_v5  ;;  %v345_v6 = vld [vmem:[%s1802_s26 + $0x60] sm:$0xff] (%p1790_p3)  ;;  %v347_v7 = vld [vmem:[%s1802_s26 + $0x70] sm:$0xff] (%p1790_p3) }
  0x15   : > { %v349_v8 = vld [vmem:[%s1802_s26 + $0x80] sm:$0xff]  ;;  %346 = vst [vmem:[%s1810_s27 + $0x30] sm:$0xff] %v345_v6  ;;  %348 = vst [vmem:[%s1810_s27 + $0x38] sm:$0xff] %v347_v7  ;;  %v351_v9 = vld [vmem:[%s1802_s26 + $0x90] sm:$0xff] }
  0x16   : > { %350 = vst [vmem:[%s1810_s27 + $0x40] sm:$0xff] %v349_v8  ;;  %v353_v10 = vld [vmem:[%s1802_s26 + $0xa0] sm:$0xff]  ;;  %v355_v11 = vld [vmem:[%s1802_s26 + $0xb0] sm:$0xff]  ;;  %352 = vst [vmem:[%s1810_s27 + $0x48] sm:$0xff] %v351_v9 }
  0x17   : > { %354 = vst [vmem:[%s1810_s27 + $0x50] sm:$0xff] %v353_v10  ;;  %356 = vst [vmem:[%s1810_s27 + $0x58] sm:$0xff] %v355_v11  ;;  %v357_v12 = vld [vmem:[%s1802_s26 + $0xc0] sm:$0xff]  ;;  %v359_v13 = vld [vmem:[%s1802_s26 + $0xd0] sm:$0xff] }
  0x18   : > { %v361_v14 = vld [vmem:[%s1802_s26 + $0xe0] sm:$0xff]  ;;  %358 = vst [vmem:[%s1810_s27 + $0x60] sm:$0xff] %v357_v12  ;;  %360 = vst [vmem:[%s1810_s27 + $0x68] sm:$0xff] %v359_v13  ;;  %v363_v15 = vld [vmem:[%s1802_s26 + $0xf0] sm:$0xff] }
  0x19   : > { %362 = vst [vmem:[%s1810_s27 + $0x70] sm:$0xff] %v361_v14  ;;  %v365_v16 = vld [vmem:[%s1802_s26 + $0x100] sm:$0xff]  ;;  %v367_v17 = vld [vmem:[%s1802_s26 + $0x110] sm:$0xff]  ;;  %364 = vst [vmem:[%s1810_s27 + $0x78] sm:$0xff] %v363_v15 }
  0x1a   : > { %366 = vst [vmem:[%s1810_s27 + $0x80] sm:$0xff] %v365_v16  ;;  %368 = vst [vmem:[%s1810_s27 + $0x88] sm:$0xff] %v367_v17  ;;  %v369_v18 = vld [vmem:[%s1802_s26 + $0x120] sm:$0xff]  ;;  %v371_v19 = vld [vmem:[%s1802_s26 + $0x130] sm:$0xff] }
  0x1b   : > { %v373_v20 = vld [vmem:[%s1802_s26 + $0x140] sm:$0xff]  ;;  %370 = vst [vmem:[%s1810_s27 + $0x90] sm:$0xff] %v369_v18  ;;  %372 = vst [vmem:[%s1810_s27 + $0x98] sm:$0xff] %v371_v19  ;;  %v375_v21 = vld [vmem:[%s1802_s26 + $0x150] sm:$0xff] }
  0x1c   : > { %374 = vst [vmem:[%s1810_s27 + $0xa0] sm:$0xff] %v373_v20  ;;  %v377_v22 = vld [vmem:[%s1802_s26 + $0x160] sm:$0xff]  ;;  %v379_v23 = vld [vmem:[%s1802_s26 + $0x170] sm:$0xff]  ;;  %376 = vst [vmem:[%s1810_s27 + $0xa8] sm:$0xff] %v375_v21 }
  0x1d   : > { %378 = vst [vmem:[%s1810_s27 + $0xb0] sm:$0xff] %v377_v22  ;;  %380 = vst [vmem:[%s1810_s27 + $0xb8] sm:$0xff] %v379_v23  ;;  %v381_v24 = vld [vmem:[%s1802_s26 + $0x180] sm:$0xff]  ;;  %v383_v25 = vld [vmem:[%s1802_s26 + $0x190] sm:$0xff] }
  0x1e   : > { %v385_v26 = vld [vmem:[%s1802_s26 + $0x1a0] sm:$0xff]  ;;  %382 = vst [vmem:[%s1810_s27 + $0xc0] sm:$0xff] %v381_v24  ;;  %384 = vst [vmem:[%s1810_s27 + $0xc8] sm:$0xff] %v383_v25  ;;  %v387_v27 = vld [vmem:[%s1802_s26 + $0x1b0] sm:$0xff] }
  0x1f   : > { %386 = vst [vmem:[%s1810_s27 + $0xd0] sm:$0xff] %v385_v26  ;;  %v389_v28 = vld [vmem:[%s1802_s26 + $0x1c0] sm:$0xff]  ;;  %v391_v29 = vld [vmem:[%s1802_s26 + $0x1d0] sm:$0xff]  ;;  %388 = vst [vmem:[%s1810_s27 + $0xd8] sm:$0xff] %v387_v27 }
  0x20   : > { %390 = vst [vmem:[%s1810_s27 + $0xe0] sm:$0xff] %v389_v28  ;;  %392 = vst [vmem:[%s1810_s27 + $0xe8] sm:$0xff] %v391_v29  ;;  %v393_v30 = vld [vmem:[%s1802_s26 + $0x1e0] sm:$0xff]  ;;  %v395_v31 = vld [vmem:[%s1802_s26 + $0x1f0] sm:$0xff] }
  0x21   : > { %v397_v32 = vld [vmem:[%s1802_s26 + $0x200] sm:$0xff]  ;;  %394 = vst [vmem:[%s1810_s27 + $0xf0] sm:$0xff] %v393_v30  ;;  %396 = vst [vmem:[%s1810_s27 + $0xf8] sm:$0xff] %v395_v31  ;;  %v399_v33 = vld [vmem:[%s1802_s26 + $0x210] sm:$0xff] }
  0x22   : > { %398 = vst [vmem:[%s1810_s27 + $0x100] sm:$0xff] %v397_v32  ;;  %v401_v34 = vld [vmem:[%s1802_s26 + $0x220] sm:$0xff]  ;;  %v403_v35 = vld [vmem:[%s1802_s26 + $0x230] sm:$0xff]  ;;  %400 = vst [vmem:[%s1810_s27 + $0x108] sm:$0xff] %v399_v33 }
  0x23   : > { %402 = vst [vmem:[%s1810_s27 + $0x110] sm:$0xff] %v401_v34  ;;  %404 = vst [vmem:[%s1810_s27 + $0x118] sm:$0xff] %v403_v35  ;;  %v405_v36 = vld [vmem:[%s1802_s26 + $0x240] sm:$0xff]  ;;  %v407_v37 = vld [vmem:[%s1802_s26 + $0x250] sm:$0xff] }
  0x24   : > { %v409_v38 = vld [vmem:[%s1802_s26 + $0x260] sm:$0xff]  ;;  %406 = vst [vmem:[%s1810_s27 + $0x120] sm:$0xff] %v405_v36  ;;  %408 = vst [vmem:[%s1810_s27 + $0x128] sm:$0xff] %v407_v37  ;;  %v411_v39 = vld [vmem:[%s1802_s26 + $0x270] sm:$0xff] }
  0x25   : > { %410 = vst [vmem:[%s1810_s27 + $0x130] sm:$0xff] %v409_v38  ;;  %v413_v40 = vld [vmem:[%s1802_s26 + $0x280] sm:$0xff]  ;;  %v415_v41 = vld [vmem:[%s1802_s26 + $0x290] sm:$0xff]  ;;  %412 = vst [vmem:[%s1810_s27 + $0x138] sm:$0xff] %v411_v39 }
  0x26   : > { %414 = vst [vmem:[%s1810_s27 + $0x140] sm:$0xff] %v413_v40  ;;  %416 = vst [vmem:[%s1810_s27 + $0x148] sm:$0xff] %v415_v41  ;;  %v417_v42 = vld [vmem:[%s1802_s26 + $0x2a0] sm:$0xff]  ;;  %v419_v43 = vld [vmem:[%s1802_s26 + $0x2b0] sm:$0xff] }
  0x27   : > { %v421_v44 = vld [vmem:[%s1802_s26 + $0x2c0] sm:$0xff]  ;;  %418 = vst [vmem:[%s1810_s27 + $0x150] sm:$0xff] %v417_v42  ;;  %420 = vst [vmem:[%s1810_s27 + $0x158] sm:$0xff] %v419_v43  ;;  %v423_v45 = vld [vmem:[%s1802_s26 + $0x2d0] sm:$0xff] }
  0x28   : > { %422 = vst [vmem:[%s1810_s27 + $0x160] sm:$0xff] %v421_v44  ;;  %v425_v46 = vld [vmem:[%s1802_s26 + $0x2e0] sm:$0xff]  ;;  %v427_v47 = vld [vmem:[%s1802_s26 + $0x2f0] sm:$0xff]  ;;  %424 = vst [vmem:[%s1810_s27 + $0x168] sm:$0xff] %v423_v45 }
  0x29   : > { %426 = vst [vmem:[%s1810_s27 + $0x170] sm:$0xff] %v425_v46  ;;  %428 = vst [vmem:[%s1810_s27 + $0x178] sm:$0xff] %v427_v47  ;;  %v429_v48 = vld [vmem:[%s1802_s26 + $0x300] sm:$0xff]  ;;  %v431_v49 = vld [vmem:[%s1802_s26 + $0x310] sm:$0xff] }
  0x2a   : > { %v433_v50 = vld [vmem:[%s1802_s26 + $0x320] sm:$0xff]  ;;  %430 = vst [vmem:[%s1810_s27 + $0x180] sm:$0xff] %v429_v48  ;;  %432 = vst [vmem:[%s1810_s27 + $0x188] sm:$0xff] %v431_v49  ;;  %v435_v51 = vld [vmem:[%s1802_s26 + $0x330] sm:$0xff] }
  0x2b   : > { %434 = vst [vmem:[%s1810_s27 + $0x190] sm:$0xff] %v433_v50  ;;  %v437_v52 = vld [vmem:[%s1802_s26 + $0x340] sm:$0xff]  ;;  %v439_v53 = vld [vmem:[%s1802_s26 + $0x350] sm:$0xff]  ;;  %436 = vst [vmem:[%s1810_s27 + $0x198] sm:$0xff] %v435_v51 }
  0x2c   : > { %438 = vst [vmem:[%s1810_s27 + $0x1a0] sm:$0xff] %v437_v52  ;;  %440 = vst [vmem:[%s1810_s27 + $0x1a8] sm:$0xff] %v439_v53  ;;  %v441_v54 = vld [vmem:[%s1802_s26 + $0x360] sm:$0xff]  ;;  %v443_v55 = vld [vmem:[%s1802_s26 + $0x370] sm:$0xff] }
  0x2d   : > { %v445_v56 = vld [vmem:[%s1802_s26 + $0x380] sm:$0xff]  ;;  %442 = vst [vmem:[%s1810_s27 + $0x1b0] sm:$0xff] %v441_v54  ;;  %444 = vst [vmem:[%s1810_s27 + $0x1b8] sm:$0xff] %v443_v55  ;;  %v447_v57 = vld [vmem:[%s1802_s26 + $0x390] sm:$0xff] }
  0x2e   : > { %446 = vst [vmem:[%s1810_s27 + $0x1c0] sm:$0xff] %v445_v56  ;;  %v449_v58 = vld [vmem:[%s1802_s26 + $0x3a0] sm:$0xff]  ;;  %v451_v59 = vld [vmem:[%s1802_s26 + $0x3b0] sm:$0xff]  ;;  %448 = vst [vmem:[%s1810_s27 + $0x1c8] sm:$0xff] %v447_v57 }
  0x2f   : > { %450 = vst [vmem:[%s1810_s27 + $0x1d0] sm:$0xff] %v449_v58  ;;  %452 = vst [vmem:[%s1810_s27 + $0x1d8] sm:$0xff] %v451_v59  ;;  %v453_v60 = vld [vmem:[%s1802_s26 + $0x3c0] sm:$0xff]  ;;  %v455_v61 = vld [vmem:[%s1802_s26 + $0x3d0] sm:$0xff] }
  0x30   : > { %v457_v62 = vld [vmem:[%s1802_s26 + $0x3e0] sm:$0xff]  ;;  %454 = vst [vmem:[%s1810_s27 + $0x1e0] sm:$0xff] %v453_v60  ;;  %456 = vst [vmem:[%s1810_s27 + $0x1e8] sm:$0xff] %v455_v61  ;;  %v459_v63 = vld [vmem:[%s1802_s26 + $0x3f0] sm:$0xff] }
  0x31   : > { %458 = vst [vmem:[%s1810_s27 + $0x1f0] sm:$0xff] %v457_v62  ;;  %v461_v0 = vld [vmem:[%s1802_s26 + $0x400] sm:$0xff]  ;;  %v463_v1 = vld [vmem:[%s1802_s26 + $0x410] sm:$0xff]  ;;  %460 = vst [vmem:[%s1810_s27 + $0x1f8] sm:$0xff] %v459_v63 }
  0x32   : > { %462 = vst [vmem:[%s1810_s27 + $0x200] sm:$0xff] %v461_v0  ;;  %464 = vst [vmem:[%s1810_s27 + $0x208] sm:$0xff] %v463_v1  ;;  %v465_v2 = vld [vmem:[%s1802_s26 + $0x420] sm:$0xff]  ;;  %v467_v3 = vld [vmem:[%s1802_s26 + $0x430] sm:$0xff] }
  0x33   : > { %v469_v4 = vld [vmem:[%s1802_s26 + $0x440] sm:$0xff]  ;;  %466 = vst [vmem:[%s1810_s27 + $0x210] sm:$0xff] %v465_v2  ;;  %468 = vst [vmem:[%s1810_s27 + $0x218] sm:$0xff] %v467_v3  ;;  %v471_v5 = vld [vmem:[%s1802_s26 + $0x450] sm:$0xff] }
  0x34   : > { %470 = vst [vmem:[%s1810_s27 + $0x220] sm:$0xff] %v469_v4  ;;  %v473_v6 = vld [vmem:[%s1802_s26 + $0x460] sm:$0xff]  ;;  %v475_v7 = vld [vmem:[%s1802_s26 + $0x470] sm:$0xff]  ;;  %472 = vst [vmem:[%s1810_s27 + $0x228] sm:$0xff] %v471_v5 }
  0x35   : > { %474 = vst [vmem:[%s1810_s27 + $0x230] sm:$0xff] %v473_v6  ;;  %476 = vst [vmem:[%s1810_s27 + $0x238] sm:$0xff] %v475_v7  ;;  %v477_v8 = vld [vmem:[%s1802_s26 + $0x480] sm:$0xff]  ;;  %v479_v9 = vld [vmem:[%s1802_s26 + $0x490] sm:$0xff] }
  0x36   : > { %v481_v10 = vld [vmem:[%s1802_s26 + $0x4a0] sm:$0xff]  ;;  %478 = vst [vmem:[%s1810_s27 + $0x240] sm:$0xff] %v477_v8  ;;  %480 = vst [vmem:[%s1810_s27 + $0x248] sm:$0xff] %v479_v9  ;;  %v483_v11 = vld [vmem:[%s1802_s26 + $0x4b0] sm:$0xff] }
  0x37   : > { %482 = vst [vmem:[%s1810_s27 + $0x250] sm:$0xff] %v481_v10  ;;  %v485_v12 = vld [vmem:[%s1802_s26 + $0x4c0] sm:$0xff]  ;;  %v487_v13 = vld [vmem:[%s1802_s26 + $0x4d0] sm:$0xff]  ;;  %484 = vst [vmem:[%s1810_s27 + $0x258] sm:$0xff] %v483_v11 }
  0x38   : > { %486 = vst [vmem:[%s1810_s27 + $0x260] sm:$0xff] %v485_v12  ;;  %488 = vst [vmem:[%s1810_s27 + $0x268] sm:$0xff] %v487_v13  ;;  %v489_v14 = vld [vmem:[%s1802_s26 + $0x4e0] sm:$0xff]  ;;  %v491_v15 = vld [vmem:[%s1802_s26 + $0x4f0] sm:$0xff] }
  0x39   : > { %v493_v16 = vld [vmem:[%s1802_s26 + $0x500] sm:$0xff]  ;;  %490 = vst [vmem:[%s1810_s27 + $0x270] sm:$0xff] %v489_v14  ;;  %492 = vst [vmem:[%s1810_s27 + $0x278] sm:$0xff] %v491_v15  ;;  %v495_v17 = vld [vmem:[%s1802_s26 + $0x510] sm:$0xff] }
  0x3a   : > { %494 = vst [vmem:[%s1810_s27 + $0x280] sm:$0xff] %v493_v16  ;;  %v497_v18 = vld [vmem:[%s1802_s26 + $0x520] sm:$0xff]  ;;  %v499_v19 = vld [vmem:[%s1802_s26 + $0x530] sm:$0xff]  ;;  %496 = vst [vmem:[%s1810_s27 + $0x288] sm:$0xff] %v495_v17 }
  0x3b   : > { %498 = vst [vmem:[%s1810_s27 + $0x290] sm:$0xff] %v497_v18  ;;  %500 = vst [vmem:[%s1810_s27 + $0x298] sm:$0xff] %v499_v19 }
  0x3c PF: > { %506 = sbr.rel (!%p1790_p3) target bundleno = 67 (0x43), region = 62  ;;  %s508_s28 = sand.u32 (%p1790_p3), 1, %s1735_s13  }
  0x3d   : > { %s1409_s29 = sshll.u32 (%p1790_p3), %s1739_s14, 1  ;;  %s1563_s30 = smul.u32 (%p1790_p3), 6, %s508_s28 }
  0x3e   : > { %s512_s6 = scalar_lea.vmem (%p1790_p3), %s2119_s2, %s1409_s29 }
  0x3f   : > { %v528_v20 = vld [vmem:[%s512_s6] sm:$0x3] (%p1790_p3)  ;;  %v530_v21 = vld [vmem:[%s512_s6 + $0x4] sm:$0x3] (%p1790_p3)  ;;  %v532_v22 = vld [vmem:[%s512_s6 + $0x8] sm:$0x3] (%p1790_p3) }
  0x40   : > { %s510_s7 = scalar_lea.vmem (%p1790_p3), [#allocation3], %s1563_s30 }
  0x41   : > { %529 = vst [vmem:[%s510_s7] sm:$0x3] (%p1790_p3), %v528_v20  ;;  %531 = vst [vmem:[%s510_s7 + $0x2] sm:$0x3] (%p1790_p3), %v530_v21 }
  0x42   : > { %533 = vst [vmem:[%s510_s7 + $0x4] sm:$0x3] (%p1790_p3), %v532_v22 }
  0x43 PF: > { %p1410_p5 = scmp.ge.s32.totalorder %s1739_s14, 1  ;;  %p553_p6 = scmp.lt.s32.totalorder %s1739_s14, 3 }
  0x45   : > { %p554_p7 = pnand %p1410_p5, %p553_p6 }
  0x46   : > { %s560_s8 = sand.u32 (!%p554_p7), 1, %s1731_s12   ;;  %v1989_v23 = vld.sshfl [vmem:[%s2117_s0] sm:$0x33 pattern:$0x76325410] (!%p554_p7)  ;;  %vm795_vm0 = vcmask (!%p554_p7), 728064  }
  0x47   : > { %557 = sbr.rel (%p554_p7) target bundleno = 407 (0x197), region = 96  ;;  %v612_v24 = vcombine.high (!%p554_p7), %v1989_v23, %v1989_v23  ;;  %vm799_vm1 = vcmask (!%p554_p7), 1043456   ;;  %vm800_vm2 = vcmask (!%p554_p7), 1044480   ;;  %v1741_v11 = vmov (!%p554_p7), 65535   ;;  %s1411_s12 = sshll.u32 (!%p554_p7), %s1403_s15, 1 }
  0x48   : > { %s1564_s9 = smul.u32 (!%p554_p7), 672, %s560_s8  ;;  %v801_v12 = vsel (!%p554_p7), %vm799_vm1, 4294967295, %v1741_v11  ;;  %vm1316_vm3 = vcmask (!%p554_p7), 1041408   ;;  %p597_p8 = scmp.lt.s32.totalorder (!%p554_p7), %s1411_s12, 3 }
  0x49   : > { %v1996_v26 = vpack.c.bf16 (!%p554_p7), %v612_v24, %v612_v24  ;;  %v2056_v18 = vsel (!%p554_p7), %vm800_vm2, %v801_v12, 0  ;;  %s1565_s18 = smul.u32 (!%p554_p7), 6, %s560_s8 }
  0x4a   : > { %s1993_s17 = scalar_lea.vmem (!%p554_p7), [#allocation2], %s1564_s9 }
  0x4b   : > { %v1591_v25 = vld [vmem:[%s1993_s17 + $0x4] ss:$8 sps:$4 sm:$0xff] (!%p554_p7)   ;;  %v1595_v28 = vld [vmem:[%s1993_s17] ss:$8 sps:$4 sm:$0xff] (!%p554_p7)   ;;  %1442 = vmatprep.mubr.msk.bf16.mxu0 (!%p554_p7), %vm795_vm0, %v1996_v26  ;;  %v1597_v30 = vld [vmem:[%s1993_s17 + $0x14] ss:$8 sps:$4 sm:$0xff] (!%p554_p7)   ;;  %1500 = vmatprep.mubr.msk.bf16.mxu1 (!%p554_p7), %vm795_vm0, %v1996_v26 }
  0x4c   : > { %v1593_v27 = vld [vmem:[%s1993_s17 + $0xe4] ss:$8 sps:$4 sm:$0xff] (!%p554_p7)   ;;  %809 = vmatprep.subr.bf16.mxu0 (!%p554_p7), %v1591_v25  ;;  %v1596_v29 = vld [vmem:[%s1993_s17 + $0xe0] ss:$8 sps:$4 sm:$0xff] (!%p554_p7)   ;;  %v1599_v31 = vld [vmem:[%s1993_s17 + $0xf4] ss:$8 sps:$4 sm:$0xff] (!%p554_p7)  }
  0x4d   : > { %1036 = vmatprep.subr.bf16.mxu1 (!%p554_p7), %v1593_v27  ;;  %810 = vmatpush1.bf16.msra.mxu0 (!%p554_p7), %v1595_v28  ;;  %v1601_v32 = vld [vmem:[%s1993_s17 + $0x10] ss:$8 sps:$4 sm:$0xff] (!%p554_p7)   ;;  %v1603_v34 = vld [vmem:[%s1993_s17 + $0x24] ss:$8 sps:$4 sm:$0xff] (!%p554_p7)   ;;  %v1607_v36 = vld [vmem:[%s1993_s17 + $0x20] ss:$8 sps:$4 sm:$0xff] (!%p554_p7)   ;;  %v615_v28 = vpack.c.bf16 (!%p554_p7), %v1989_v23, %v1989_v23 }
  0x4e   : > { %1037 = vmatpush1.bf16.msra.mxu1 %v1596_v29  ;;  %811 = vmatprep.subr.bf16.mxu0 %v1597_v30  ;;  %v1602_v33 = vld [vmem:[%s1993_s17 + $0xf0] ss:$8 sps:$4 sm:$0xff]   ;;  %v1605_v35 = vld [vmem:[%s1993_s17 + $0x104] ss:$8 sps:$4 sm:$0xff]   ;;  %v1608_v37 = vld [vmem:[%s1993_s17 + $0x100] ss:$8 sps:$4 sm:$0xff]  }
  0x4f   : > { %1038 = vmatprep.subr.bf16.mxu1 %v1599_v31  ;;  %v1609_v38 = vld [vmem:[%s1993_s17 + $0x34] ss:$8 sps:$4 sm:$0xff]   ;;  %v1613_v40 = vld [vmem:[%s1993_s17 + $0x30] ss:$8 sps:$4 sm:$0xff]   ;;  %v1615_v42 = vld [vmem:[%s1993_s17 + $0x44] ss:$8 sps:$4 sm:$0xff]  }
  0x50   : > { %v1611_v39 = vld [vmem:[%s1993_s17 + $0x114] ss:$8 sps:$4 sm:$0xff]   ;;  %v1614_v41 = vld [vmem:[%s1993_s17 + $0x110] ss:$8 sps:$4 sm:$0xff]   ;;  %v1617_v43 = vld [vmem:[%s1993_s17 + $0x124] ss:$8 sps:$4 sm:$0xff]  }
  0x51   : > { %812 = vmatpush1.bf16.msra.mxu0 %v1601_v32  ;;  %v1619_v44 = vld [vmem:[%s1993_s17 + $0x40] ss:$8 sps:$4 sm:$0xff]   ;;  %v1621_v46 = vld [vmem:[%s1993_s17 + $0x54] ss:$8 sps:$4 sm:$0xff]   ;;  %v1625_v48 = vld [vmem:[%s1993_s17 + $0x50] ss:$8 sps:$4 sm:$0xff]  }
  0x52   : > { %1039 = vmatpush1.bf16.msra.mxu1 %v1602_v33  ;;  %813 = vmatprep.subr.bf16.mxu0 %v1603_v34  ;;  %v1620_v45 = vld [vmem:[%s1993_s17 + $0x120] ss:$8 sps:$4 sm:$0xff]   ;;  %v1623_v47 = vld [vmem:[%s1993_s17 + $0x134] ss:$8 sps:$4 sm:$0xff]   ;;  %v1626_v49 = vld [vmem:[%s1993_s17 + $0x130] ss:$8 sps:$4 sm:$0xff]  }
  0x53   : > { %1040 = vmatprep.subr.bf16.mxu1 %v1605_v35  ;;  %v1627_v50 = vld [vmem:[%s1993_s17 + $0x64] ss:$8 sps:$4 sm:$0xff]   ;;  %v1631_v52 = vld [vmem:[%s1993_s17 + $0x60] ss:$8 sps:$4 sm:$0xff]   ;;  %v1633_v54 = vld [vmem:[%s1993_s17 + $0x74] ss:$8 sps:$4 sm:$0xff]  }
  0x54   : > { %v1629_v51 = vld [vmem:[%s1993_s17 + $0x144] ss:$8 sps:$4 sm:$0xff]   ;;  %v1632_v53 = vld [vmem:[%s1993_s17 + $0x140] ss:$8 sps:$4 sm:$0xff]   ;;  %v1635_v55 = vld [vmem:[%s1993_s17 + $0x154] ss:$8 sps:$4 sm:$0xff]  }
  0x55   : > { %814 = vmatpush1.bf16.msra.mxu0 %v1607_v36  ;;  %v1637_v56 = vld [vmem:[%s1993_s17 + $0x70] ss:$8 sps:$4 sm:$0xff]   ;;  %v1639_v58 = vld [vmem:[%s1993_s17 + $0x84] ss:$8 sps:$4 sm:$0xff]   ;;  %v1643_v60 = vld [vmem:[%s1993_s17 + $0x80] ss:$8 sps:$4 sm:$0xff]  }
  0x56   : > { %1041 = vmatpush1.bf16.msra.mxu1 %v1608_v37  ;;  %815 = vmatprep.subr.bf16.mxu0 %v1609_v38  ;;  %v1638_v57 = vld [vmem:[%s1993_s17 + $0x150] ss:$8 sps:$4 sm:$0xff]   ;;  %v1641_v59 = vld [vmem:[%s1993_s17 + $0x164] ss:$8 sps:$4 sm:$0xff]   ;;  %v1644_v61 = vld [vmem:[%s1993_s17 + $0x160] ss:$8 sps:$4 sm:$0xff]  }
  0x57   : > { %1042 = vmatprep.subr.bf16.mxu1 %v1611_v39  ;;  %v1645_v62 = vld [vmem:[%s1993_s17 + $0x94] ss:$8 sps:$4 sm:$0xff]   ;;  %v1649_v0 = vld [vmem:[%s1993_s17 + $0x90] ss:$8 sps:$4 sm:$0xff]   ;;  %v1651_v2 = vld [vmem:[%s1993_s17 + $0xa4] ss:$8 sps:$4 sm:$0xff]  }
  0x58   : > { %v1647_v63 = vld [vmem:[%s1993_s17 + $0x174] ss:$8 sps:$4 sm:$0xff]   ;;  %v1650_v1 = vld [vmem:[%s1993_s17 + $0x170] ss:$8 sps:$4 sm:$0xff]   ;;  %v1653_v3 = vld [vmem:[%s1993_s17 + $0x184] ss:$8 sps:$4 sm:$0xff]  }
  0x59   : > { %816 = vmatpush1.bf16.msra.mxu0 %v1613_v40  ;;  %v1655_v4 = vld [vmem:[%s1993_s17 + $0xa0] ss:$8 sps:$4 sm:$0xff]   ;;  %v1657_v6 = vld [vmem:[%s1993_s17 + $0xb4] ss:$8 sps:$4 sm:$0xff]   ;;  %v1661_v8 = vld [vmem:[%s1993_s17 + $0xb0] ss:$8 sps:$4 sm:$0xff]  }
  0x5a   : > { %1043 = vmatpush1.bf16.msra.mxu1 %v1614_v41  ;;  %817 = vmatprep.subr.bf16.mxu0 %v1615_v42  ;;  %v1656_v5 = vld [vmem:[%s1993_s17 + $0x180] ss:$8 sps:$4 sm:$0xff]   ;;  %v1659_v7 = vld [vmem:[%s1993_s17 + $0x194] ss:$8 sps:$4 sm:$0xff]   ;;  %v1662_v9 = vld [vmem:[%s1993_s17 + $0x190] ss:$8 sps:$4 sm:$0xff]  }
  0x5b   : > { %1044 = vmatprep.subr.bf16.mxu1 %v1617_v43  ;;  %v1663_v10 = vld [vmem:[%s1993_s17 + $0xc4] ss:$8 sps:$4 sm:$0xff]   ;;  %v1669_v13 = vld [vmem:[%s1993_s17 + $0xd4] ss:$8 sps:$4 sm:$0x1f]   ;;  %s569_s20 = scalar_lea.vmem [#allocation3], %s1565_s18 }
  0x5c   : > { %v1665_v14 = vld [vmem:[%s1993_s17 + $0x1a4] ss:$8 sps:$4 sm:$0xff]   ;;  %v1671_v15 = vld [vmem:[%s1993_s17 + $0x1b4] ss:$8 sps:$4 sm:$0x1f]   ;;  %v807_v21 = vand.u32 %v1669_v13, %v2056_v18  ;;  %s2126_s12 = smov (!%p597_p8, %s1411_s12), 3 }
  0x5d   : > { %818 = vmatpush1.bf16.msra.mxu0 %v1619_v44  ;;  %v1667_v16 = vld [vmem:[%s1993_s17 + $0xc0] ss:$8 sps:$4 sm:$0xff]   ;;  %v1673_v19 = vld [vmem:[%s1993_s17 + $0xd0] ss:$8 sps:$4 sm:$0x1f]   ;;  %v1034_v22 = vand.u32 %v1671_v15, %v2056_v18  ;;  %s1412_s21 = sshll.u32 %s2126_s12, 3 }
  0x5e   : > { %1045 = vmatpush1.bf16.msra.mxu1 %v1620_v45  ;;  %819 = vmatprep.subr.bf16.mxu0 %v1621_v46  ;;  %v1668_v17 = vld [vmem:[%s1993_s17 + $0x1a0] ss:$8 sps:$4 sm:$0xff]   ;;  %v1674_v20 = vld [vmem:[%s1993_s17 + $0x1b0] ss:$8 sps:$4 sm:$0x1f]   ;;  %v804_v24 = vand.u32 %v1673_v19, %v2056_v18  ;;  %s600_s24 = scalar_lea.vmem %s2120_s3, %s1412_s21 }
  0x5f   : > { %1046 = vmatprep.subr.bf16.mxu1 %v1623_v47  ;;  %v1031_v25 = vand.u32 %v1674_v20, %v2056_v18  ;;  %v1677_v27 = vld [vmem:[%s1993_s17 + $0x1c4] ss:$8 sps:$4 sm:$0xff]   ;;  %v1675_v29 = vld [vmem:[%s1993_s17 + $0x1c0] ss:$8 sps:$4 sm:$0xff]   ;;  %v1680_v30 = vld [vmem:[%s1993_s17 + $0x1d4] ss:$8 sps:$4 sm:$0xff]  }
  0x60   : > { %v1678_v31 = vld [vmem:[%s1993_s17 + $0x1d0] ss:$8 sps:$4 sm:$0xff]   ;;  %v1683_v23 = vld [vmem:[%s1993_s17 + $0x1e4] ss:$8 sps:$4 sm:$0xff]   ;;  %v1681_v32 = vld [vmem:[%s1993_s17 + $0x1e0] ss:$8 sps:$4 sm:$0xff]  }
  0x61   : > { %820 = vmatpush1.bf16.msra.mxu0 %v1625_v48  ;;  %v1686_v33 = vld [vmem:[%s1993_s17 + $0x1f4] ss:$8 sps:$4 sm:$0xff]   ;;  %v1684_v34 = vld [vmem:[%s1993_s17 + $0x1f0] ss:$8 sps:$4 sm:$0xff]   ;;  %v1689_v35 = vld [vmem:[%s1993_s17 + $0x204] ss:$8 sps:$4 sm:$0xff]  }
  0x62   : > { %1047 = vmatpush1.bf16.msra.mxu1 %v1626_v49  ;;  %821 = vmatprep.subr.bf16.mxu0 %v1627_v50  ;;  %v1687_v36 = vld [vmem:[%s1993_s17 + $0x200] ss:$8 sps:$4 sm:$0xff]   ;;  %v1690_v37 = vld [vmem:[%s1993_s17 + $0x210] ss:$8 sps:$4 sm:$0xff]   ;;  %v1695_v38 = vld [vmem:[%s1993_s17 + $0x224] ss:$8 sps:$4 sm:$0xff]  }
  0x63   : > { %1048 = vmatprep.subr.bf16.mxu1 %v1629_v51  ;;  %v1693_v39 = vld [vmem:[%s1993_s17 + $0x220] ss:$8 sps:$4 sm:$0xff]   ;;  %v1698_v40 = vld [vmem:[%s1993_s17 + $0x234] ss:$8 sps:$4 sm:$0xff]   ;;  %v1696_v41 = vld [vmem:[%s1993_s17 + $0x230] ss:$8 sps:$4 sm:$0xff]  }
  0x64   : > { %v1701_v42 = vld [vmem:[%s1993_s17 + $0x244] ss:$8 sps:$4 sm:$0xff]   ;;  %v1699_v43 = vld [vmem:[%s1993_s17 + $0x240] ss:$8 sps:$4 sm:$0xff]   ;;  %v1704_v44 = vld [vmem:[%s1993_s17 + $0x254] ss:$8 sps:$4 sm:$0xff]  }
  0x65   : > { %822 = vmatpush1.bf16.msra.mxu0 %v1631_v52  ;;  %v1702_v45 = vld [vmem:[%s1993_s17 + $0x250] ss:$8 sps:$4 sm:$0xff]   ;;  %v1707_v46 = vld [vmem:[%s1993_s17 + $0x264] ss:$8 sps:$4 sm:$0xff]   ;;  %v1705_v47 = vld [vmem:[%s1993_s17 + $0x260] ss:$8 sps:$4 sm:$0xff]  }
  0x66   : > { %1049 = vmatpush1.bf16.msra.mxu1 %v1632_v53  ;;  %823 = vmatprep.subr.bf16.mxu0 %v1633_v54  ;;  %v1710_v48 = vld [vmem:[%s1993_s17 + $0x274] ss:$8 sps:$4 sm:$0xff]   ;;  %v1708_v49 = vld [vmem:[%s1993_s17 + $0x270] ss:$8 sps:$4 sm:$0xff]   ;;  %v1713_v50 = vld [vmem:[%s1993_s17 + $0x284] ss:$8 sps:$4 sm:$0xff]  }
  0x67   : > { %1050 = vmatprep.subr.bf16.mxu1 %v1635_v55  ;;  %v1716_v51 = vld [vmem:[%s1993_s17 + $0x294] ss:$8 sps:$4 sm:$0x1f]   ;;  %v1711_v52 = vld [vmem:[%s1993_s17 + $0x280] ss:$8 sps:$4 sm:$0xff]  }
  0x68   : > { %v1714_v53 = vld [vmem:[%s1993_s17 + $0x290] ss:$8 sps:$4 sm:$0x1f]   ;;  %v1261_v54 = vand.u32 %v1716_v51, %v2056_v18 }
  0x69   : > { %824 = vmatpush1.bf16.msra.mxu0 %v1637_v56  ;;  %v1258_v55 = vand.u32 %v1714_v53, %v2056_v18  ;;  %v647_v56 = vlaneseq  ;;  %v1529_v18 = vld [vmem:[%s569_s20 + $0x4] sm:$0x3] }
  0x6a   : > { %1051 = vmatpush1.bf16.msra.mxu1 %v1638_v57  ;;  %825 = vmatprep.subr.bf16.mxu0 %v1639_v58 }
  0x6b   : > { %1052 = vmatprep.subr.bf16.mxu1 %v1641_v59  ;;  %v648_v57 = vshrl.u32 %v647_v56, 7  ;;  %v645_v59 = vld [vmem:[%s569_s20] sm:$0x3] }
  0x6d   : > { %826 = vmatpush1.bf16.msra.mxu0 %v1643_v60  ;;  %v649_v58 = vsub.s32 0, %v648_v57  ;;  %v1471_v60 = vld [vmem:[%s569_s20 + $0x2] sm:$0x3] }
  0x6e   : > { %1053 = vmatpush1.bf16.msra.mxu1 %v1644_v61  ;;  %827 = vmatprep.subr.bf16.mxu0 %v1645_v62  ;;  %v653_v61 = vsub.s32 1, %v648_v57 }
  0x6f   : > { %1054 = vmatprep.subr.bf16.mxu1 %v1647_v63  ;;  %v650_v62 = vrot.slane %v645_v59, %v649_v58  ;;  %v885_v63 = vrot.slane %v1471_v60, %v649_v58  ;;  %v1112_v19 = vrot.slane %v1529_v18, %v649_v58 }
  0x70   : > { %v1116_v20 = vrot.slane %v1529_v18, %v653_v61 }
  0x71   : > { %828 = vmatpush1.bf16.msra.mxu0 %v1649_v0  ;;  %v654_v0 = vrot.slane %v645_v59, %v653_v61 }
  0x72   : > { %1055 = vmatpush1.bf16.msra.mxu1 %v1650_v1  ;;  %829 = vmatprep.subr.bf16.mxu0 %v1651_v2  ;;  %v889_v1 = vrot.slane %v1471_v60, %v653_v61 }
  0x73   : > { %1056 = vmatprep.subr.bf16.mxu1 %v1653_v3 }
  0x75   : > { %830 = vmatpush1.bf16.msra.mxu0 %v1655_v4 }
  0x76   : > { %1057 = vmatpush1.bf16.msra.mxu1 %v1656_v5  ;;  %831 = vmatprep.subr.bf16.mxu0 %v1657_v6 }
  0x77   : > { %1058 = vmatprep.subr.bf16.mxu1 %v1659_v7 }
  0x79   : > { %832 = vmatpush1.bf16.msra.mxu0 %v1661_v8 }
  0x7a   : > { %1059 = vmatpush1.bf16.msra.mxu1 %v1662_v9  ;;  %833 = vmatprep.subr.bf16.mxu0 %v1663_v10 }
  0x7b   : > { %1060 = vmatprep.subr.bf16.mxu1 %v1665_v14 }
  0x7d   : > { %834 = vmatpush1.bf16.msra.mxu0 %v1667_v16 }
  0x7e   : > { %1061 = vmatpush1.bf16.msra.mxu1 %v1668_v17  ;;  %835 = vmatprep.subr.bf16.mxu0 %v807_v21 }
  0x7f   : > { %1062 = vmatprep.subr.bf16.mxu1 %v1034_v22 }
  0x81   : > { %836 = vmatpush1.bf16.msra.mxu0 %v804_v24 }
  0x82   : > { %1063 = vmatpush1.bf16.msra.mxu1 %v1031_v25  ;;  %1263 = vmatprep.subr.bf16.mxu0 %v1677_v27 }
  0x84   : > { %842 = vmatmul.mubr.bf16.vlgmr.msra.gmra.mrb[0].mxu0 %v615_v28 }
  0x85   : > { %1069 = vmatmul.mubr.bf16.vlgmr.msra.gmra.mrb[0].mxu1 %v615_v28  ;;  %1264 = vmatpush1.bf16.msra.mxu0 %v1675_v29 }
  0x86   : > { %1558 = vmatprep.mubr.msk.bf16.mxu0 %vm795_vm0, %v1996_v26  ;;  %1265 = vmatprep.subr.bf16.mxu0 %v1680_v30  ;;  %v1692_v26 = vld [vmem:[%s1993_s17 + $0x214] ss:$8 sps:$4 sm:$0xff]  }
  0x89   : > { %1266 = vmatpush1.bf16.msra.mxu0 %v1678_v31 }
  0x8a   : > { %1267 = vmatprep.subr.bf16.mxu0 %v1683_v23 }
  0x8d   : > { %1268 = vmatpush1.bf16.msra.mxu0 %v1681_v32 }
  0x8e   : > { %1269 = vmatprep.subr.bf16.mxu0 %v1686_v33 }
  0x91   : > { %1270 = vmatpush1.bf16.msra.mxu0 %v1684_v34 }
  0x92   : > { %1271 = vmatprep.subr.bf16.mxu0 %v1689_v35 }
  0x95   : > { %1272 = vmatpush1.bf16.msra.mxu0 %v1687_v36 }
  0x96   : > { %1273 = vmatprep.subr.bf16.mxu0 %v1692_v26 }
  0x99   : > { %1274 = vmatpush1.bf16.msra.mxu0 %v1690_v37 }
  0x9a   : > { %1275 = vmatprep.subr.bf16.mxu0 %v1695_v38 }
  0x9d   : > { %1276 = vmatpush1.bf16.msra.mxu0 %v1693_v39 }
  0x9e   : > { %1277 = vmatprep.subr.bf16.mxu0 %v1698_v40 }
  0xa1   : > { %1278 = vmatpush1.bf16.msra.mxu0 %v1696_v41 }
  0xa2   : > { %1279 = vmatprep.subr.bf16.mxu0 %v1701_v42 }
  0xa5   : > { %1280 = vmatpush1.bf16.msra.mxu0 %v1699_v43 }
  0xa6   : > { %1281 = vmatprep.subr.bf16.mxu0 %v1704_v44 }
  0xa9   : > { %1282 = vmatpush1.bf16.msra.mxu0 %v1702_v45 }
  0xaa   : > { %1283 = vmatprep.subr.bf16.mxu0 %v1707_v46 }
  0xad   : > { %1284 = vmatpush1.bf16.msra.mxu0 %v1705_v47 }
  0xae   : > { %1285 = vmatprep.subr.bf16.mxu0 %v1710_v48 }
  0xb1   : > { %1286 = vmatpush1.bf16.msra.mxu0 %v1708_v49 }
  0xb2   : > { %1287 = vmatprep.subr.bf16.mxu0 %v1713_v50 }
  0xb5   : > { %1288 = vmatpush1.bf16.msra.mxu0 %v1711_v52 }
  0xb6   : > { %1289 = vmatprep.subr.bf16.mxu0 %v1261_v54 }
  0xb9   : > { %1290 = vmatpush1.bf16.msra.mxu0 %v1258_v55 }
  0xbc   : > { %1296 = vmatmul.mubr.bf16.vlgmr.msra.gmra.mrb[4].mxu0 %v615_v28 }
 0x157   : > { %v843_v2 = vpop.f32.mrb[0].mxu0 }
 0x158   : > { %v1070_v3 = vpop.f32.mrb[0].mxu1  ;;  %v844_v4 = vadd.f32 %v843_v2, %v650_v62  ;;  %v845_v6 = vpop.f32.mrb[1].mxu0 }
 0x159   : > { %v1071_v5 = vadd.f32 %v1070_v3, %v885_v63  ;;  %v1072_v7 = vpop.f32.mrb[1].mxu1  ;;  %v846_v8 = vadd.f32 %v845_v6, %v654_v0  ;;  %v847_v10 = vpop.f32.mrb[2].mxu0 }
 0x15a   : > { %v1073_v9 = vadd.f32 %v1072_v7, %v889_v1  ;;  %v1074_v11 = vpop.f32.mrb[2].mxu1  ;;  %v848_v13 = vpop.f32.mrb[3].mxu0 }
 0x15b   : > { %v1306_v12 = vrot.slane %v1071_v5, 6  ;;  %v1075_v14 = vpop.f32.mrb[3].mxu1 }
 0x15c   : > { %v1307_v15 = vrot.slane %v1073_v9, 6 }
 0x15d   : > { %v1317_v16 = vsel %vm1316_vm3, %v844_v4, %v1306_v12 }
 0x15e   : > { %v1318_v17 = vsel %vm1316_vm3, %v846_v8, %v1307_v15 }
 0x18f   : > { %v1297_v21 = vpop.f32.mrb[4].mxu0 }
 0x190   : > { %v1298_v22 = vadd.f32 %v1297_v21, %v1112_v19  ;;  %v1299_v24 = vpop.f32.mrb[5].mxu0 }
 0x191   : > { %v1300_v25 = vadd.f32 %v1299_v24, %v1116_v20  ;;  %v1301_v27 = vpop.f32.mrb[6].mxu0 }
 0x192   : > { %v1312_v28 = vrot.slane %v1298_v22, 4  ;;  %v1302_v29 = vpop.f32.mrb[7].mxu0 }
 0x193   : > { %v1313_v30 = vrot.slane %v1300_v25, 4 }
 0x194   : > { %v1319_v31 = vsel %vm799_vm1, %v1317_v16, %v1312_v28 }
 0x195   : > { %1321 = vst [vmem:[%s600_s24] sm:$0x3f] %v1319_v31  ;;  %v1320_v23 = vsel %vm799_vm1, %v1318_v17, %v1313_v30 }
 0x196   : > { %1322 = vst [vmem:[%s600_s24 + $0x8] sm:$0x3f] %v1320_v23 }
 0x197 PF: > { %p10_p9 = scmp.ge.s32.totalorder %s1779_s16, 4   ;;  %s2122_s12 = smov %s1735_s13 }
 0x198   : > { %s2123_s13 = smov %s1788_s19  ;;  %s2124_s14 = smov %s1779_s16 }
 0x199   :  { %12 = sbr.rel (!%p10_p9) target bundleno = 2 (0x2), region = 151 }

// kernel: _lambda_.3
= control target key start
LH: loop header
LB: loop body
LE: loop exit
PB: predicated region body
PF: predicated region fallthrough
CT: control target
= control target key end

     0   :  { %s1181_s18 = smov 0   ;;  %s1183_s19 = smov 0   ;;  %s1399_s0 = inlined_call_operand.vmem [shape: f32[24,24], index: 0, kind: input, shape index: {}]   ;;  %s1400_s1 = inlined_call_operand.vmem [shape: bf16[24,512], index: 1, kind: input, shape index: {}]   ;;  %s1401_s2 = inlined_call_operand.vmem [shape: f32[6,512], index: 2, kind: input, shape index: {}]   ;;  %s1402_s3 = inlined_call_operand.vmem [shape: bf16[512,19], index: 3, kind: input, shape index: {}]   ;;  %s1403_s4 = inlined_call_operand.vmem [shape: f32[6,512], index: 4, kind: output, shape index: {0}]   ;;  %s1404_s5 = inlined_call_operand.vmem [shape: f32[2,6,19], index: 5, kind: output, shape index: {1}]  }
   0x1   :  { %s1185_s20 = smov 0  }
   0x2 LB: > { %s1194_s21 = sadd.s32 4294967295, %s1148_s20   ;;  %s1196_s22 = sadd.s32 1, %s1148_s20   ;;  %s1148_s20 = sphi %s1185_s20, %s1407_s20   ;;  %s1144_s19 = sphi %s1183_s19, %s1406_s19   ;;  %s1140_s18 = sphi %s1181_s18, %s1405_s18  }
   0x3   : > { %s41_s23 = ssub.s32 %s1148_s20, %s1196_s22  ;;  %s44_s24 = sadd.s32 1, %s1144_s19 }
   0x4   : > { %p42_p0 = scmp.eq.s32.totalorder %s41_s23, 0  ;;  %p51_p1 = scmp.ne.s32.totalorder %s1144_s19, %s1140_s18 }
   0x5   : > { %p52_p2 = scmp.eq.s32.totalorder %s1148_s20, 0  ;;  %p927_p4 = scmp.ge.s32.totalorder %s1148_s20, 2 }
   0x6   : > { %s1203_s25 = scalar_select %p42_p0, %s1144_s19, %s44_s24  }
   0x7   : > { %p53_p3 = por %p52_p2, %p51_p1  ;;  %184 = sbr.rel (%p927_p4) target bundleno = 21 (0x15), region = 20 }
   0xe   : > { %187 = sbr.rel (!%p53_p3) target bundleno = 21 (0x15), region = 24  ;;  %s189_s26 = sand.u32 (%p53_p3), 1, %s1144_s19  }
   0xf   : > { %s943_s27 = sshll.u32 (%p53_p3), %s1148_s20, 3  ;;  %s1096_s28 = smul.u32 (%p53_p3), 24, %s189_s26 }
  0x10   : > { %s194_s6 = scalar_lea.vmem (%p53_p3), %s1400_s1, %s943_s27 }
  0x11   : > { %v226_v0 = vld [vmem:[%s194_s6] sm:$0xff] (%p53_p3)  ;;  %v228_v1 = vld [vmem:[%s194_s6 + $0x10] sm:$0xff] (%p53_p3)  ;;  %s191_s7 = scalar_lea.vmem (%p53_p3), [#allocation2], %s1096_s28 }
  0x12   : > { %v230_v2 = vld [vmem:[%s194_s6 + $0x20] sm:$0xff] (%p53_p3)  ;;  %227 = vst [vmem:[%s191_s7] sm:$0xff] (%p53_p3), %v226_v0  ;;  %229 = vst [vmem:[%s191_s7 + $0x8] sm:$0xff] (%p53_p3), %v228_v1 }
  0x13   : > { %231 = vst [vmem:[%s191_s7 + $0x10] sm:$0xff] (%p53_p3), %v230_v2 }
  0x15 PF: > { %p930_p5 = scmp.ge.s32.totalorder %s1148_s20, 1  ;;  %p254_p6 = scmp.lt.s32.totalorder %s1148_s20, 3 }
  0x17   : > { %p255_p7 = pnand %p930_p5, %p254_p6 }
  0x18   : > { %s261_s8 = sand.u32 (!%p255_p7), 1, %s1140_s18   ;;  %v1150_v3 = vmov (!%p255_p7), 0.0   ;;  %s933_s10 = sshll.u32 (!%p255_p7), %s1194_s21, 5  ;;  %v334_v12 = vld [vmem:[%s1399_s0] sm:$0xff] (!%p255_p7)  ;;  %vm337_vm0 = vcmask (!%p255_p7), 195584   ;;  %v335_v14 = vld [vmem:[%s1399_s0 + $0x8] sm:$0xff] (!%p255_p7) }
  0x19   : > { %258 = sbr.rel (%p255_p7) target bundleno = 501 (0x1f5), region = 70  ;;  %411 = vmatprep.mubr.f32.mxu0 (!%p255_p7), %v1150_v3  ;;  %p310_p8 = scmp.lt.s32.totalorder (!%p255_p7), %s933_s10, 63  ;;  %v336_v15 = vld [vmem:[%s1399_s0 + $0x10] sm:$0xff] (!%p255_p7)  ;;  %vm654_vm1 = vcmask (!%p255_p7), 1040384   ;;  %vm657_vm2 = vcmask (!%p255_p7), 1041408   ;;  %vm660_vm3 = vcmask (!%p255_p7), 1042432  }
  0x1a   : > { %s1097_s9 = smul.u32 (!%p255_p7), 24, %s261_s8  ;;  %s931_s26 = sshll.u32 (!%p255_p7), %s1194_s21, 1  ;;  %vm663_vm4 = vcmask (!%p255_p7), 1043456   ;;  %vm666_vm5 = vcmask (!%p255_p7), 1044480   ;;  %vm805_vm6 = vcmask (!%p255_p7), 152576  }
  0x1b   : > { %p304_p9 = scmp.lt.s32.totalorder (!%p255_p7), %s931_s26, 3  ;;  %p321_p10 = scmp.lt.s32.totalorder (!%p255_p7), %s1194_s21, 1 }
  0x1c   : > { %s263_s11 = scalar_lea.vmem (!%p255_p7), [#allocation2], %s1097_s9 }
  0x1d   : > { %v1123_v4 = vld [vmem:[%s263_s11 + $0x4] ss:$8 sps:$4 sm:$0xff] (!%p255_p7)   ;;  %v1125_v5 = vld [vmem:[%s263_s11] ss:$8 sps:$4 sm:$0xff] (!%p255_p7)   ;;  %v327_v6 = vld [vmem:[%s263_s11 + $0x10] sm:$0xff] (!%p255_p7) }
  0x1e   : > { %1059 = vmatprep.subr.bf16.mxu0 (!%p255_p7), %v1123_v4  ;;  %v333_v7 = vunpack.c.h.bf16 (!%p255_p7), %v327_v6  ;;  %v332_v8 = vunpack.c.l.bf16 (!%p255_p7), %v327_v6 }
  0x1f   : > { %1061 = vmatpush1.bf16.msra.mxu0 (!%p255_p7), %v1125_v5 }
  0x20   : > { %s1409_s10 = smov (!%p310_p8, %s933_s10), 63  ;;  %351 = vmatprep.subr.mxu0 %v333_v7  ;;  %s1411_s26 = smov (!%p304_p9, %s931_s26), 3 }
  0x21   : > { %s934_s12 = sshll.u32 %s1409_s10, 2  ;;  %s932_s27 = sshll.u32 %s1411_s26, 3 }
  0x22   : > { %s1214_s15 = scalar_lea.vmem %s1402_s3, %s934_s12  ;;  %s307_s30 = scalar_lea.vmem %s1401_s2, %s932_s27 }
  0x23   : > { %v1015_v9 = vld [vmem:[%s1214_s15 + $0x40] sm:$0xff]   ;;  %v1016_v11 = vld [vmem:[%s1214_s15 + $0x48] sm:$0xff]   ;;  %352 = vmatpush1.msra.mxu0 %v332_v8  ;;  %v1017_v16 = vld [vmem:[%s1214_s15 + $0x50] sm:$0xff]   ;;  %s319_s8 = scalar_lea.vmem %s1403_s4, %s932_s27  ;;  %s1413_s21 = smov (!%p321_p10, %s1194_s21), 1 }
  0x24   : > { %v945_v10 = vld [vmem:[%s1214_s15] sm:$0xff]   ;;  %1063 = vmatprep.subr.bf16.mxu1 %v1015_v9  ;;  %v1008_v13 = vld [vmem:[%s1214_s15 + $0x8] sm:$0xff]   ;;  %938 = vmatmul.mubr.msk.f32.vlgmr.msra.gmra.mrb[0].mxu0 %vm337_vm0, %v334_v12  ;;  %v1009_v17 = vld [vmem:[%s1214_s15 + $0x10] sm:$0xff]   ;;  %s937_s9 = sshll.u32 %s1413_s21, 3 }
  0x25   : > { %1065 = vmatpush3.bf16.msra.mxu1 %v945_v10  ;;  %417 = vmatprep.mubr.f32.mxu0 %v1150_v3  ;;  %v1018_v18 = vld [vmem:[%s1214_s15 + $0x58] sm:$0xff]   ;;  %v1019_v20 = vld [vmem:[%s1214_s15 + $0x60] sm:$0xff]   ;;  %v1020_v22 = vld [vmem:[%s1214_s15 + $0x68] sm:$0xff]   ;;  %s324_s12 = scalar_lea.vmem %s1404_s5, %s937_s9 }
  0x26   : > { %1067 = vmatprep.subr.bf16.mxu1 %v1016_v11  ;;  %v1010_v19 = vld [vmem:[%s1214_s15 + $0x18] sm:$0xff]   ;;  %v1011_v21 = vld [vmem:[%s1214_s15 + $0x20] sm:$0xff]   ;;  %v1012_v23 = vld [vmem:[%s1214_s15 + $0x28] sm:$0xff]  }
  0x27   : > { %v1021_v24 = vld [vmem:[%s1214_s15 + $0x70] sm:$0xff]   ;;  %v1022_v26 = vld [vmem:[%s1214_s15 + $0x78] sm:$0xff]   ;;  %v1250_v28 = vld [vmem:[%s307_s30] sm:$0x3f] }
  0x28   : > { %939 = vmatmul.mubr.msk.f32.gmra.mrb[2].mxu0 %vm337_vm0, %v335_v14  ;;  %v1013_v25 = vld [vmem:[%s1214_s15 + $0x30] sm:$0xff]   ;;  %v1014_v27 = vld [vmem:[%s1214_s15 + $0x38] sm:$0xff]   ;;  %v1252_v29 = vld [vmem:[%s307_s30 + $0x8] sm:$0x3f]  ;;  %v1255_v30 = vrot.slane %v1250_v28, 1  ;;  %v1258_v31 = vrot.slane %v1250_v28, 2 }
  0x29   : > { %1069 = vmatpush3.bf16.msra.mxu1 %v1008_v13  ;;  %423 = vmatprep.mubr.f32.mxu0 %v1150_v3  ;;  %v1261_v32 = vrot.slane %v1250_v28, 5  ;;  %v1264_v33 = vrot.slane %v1250_v28, 6  ;;  %v472_v34 = vrot.slane %v1250_v28, 4  ;;  %v437_v35 = vrot.slane %v1252_v29, 1 }
  0x2a   : > { %1071 = vmatprep.subr.bf16.mxu1 %v1017_v16  ;;  %v451_v36 = vrot.slane %v1252_v29, 2  ;;  %v473_v37 = vrot.slane %v1252_v29, 4  ;;  %v1273_v39 = vrot.slane %v1252_v29, 5  ;;  %v493_v40 = vrot.slane %v1252_v29, 6 }
  0x2b   : > { %v579_v41 = vrot.slane %v1252_v29, 3  ;;  %v551_v42 = vrot.slane %v1252_v29, 7  ;;  %v550_v46 = vrot.slane %v1250_v28, 7  ;;  %v578_v47 = vrot.slane %v1250_v28, 3 }
  0x2c   : > { %940 = vmatmul.mubr.msk.f32.gmra.mrb[4].mxu0 %vm337_vm0, %v336_v15 }
  0x2d   : > { %1073 = vmatpush3.bf16.msra.mxu1 %v1009_v17 }
  0x2e   : > { %1075 = vmatprep.subr.bf16.mxu1 %v1018_v18 }
  0x31   : > { %1077 = vmatpush3.bf16.msra.mxu1 %v1010_v19 }
  0x32   : > { %1079 = vmatprep.subr.bf16.mxu1 %v1019_v20 }
  0x35   : > { %1081 = vmatpush3.bf16.msra.mxu1 %v1011_v21 }
  0x36   : > { %1083 = vmatprep.subr.bf16.mxu1 %v1020_v22 }
  0x39   : > { %1085 = vmatpush3.bf16.msra.mxu1 %v1012_v23 }
  0x3a   : > { %1087 = vmatprep.subr.bf16.mxu1 %v1021_v24 }
  0x3d   : > { %1089 = vmatpush3.bf16.msra.mxu1 %v1013_v25 }
  0x3e   : > { %1091 = vmatprep.subr.bf16.mxu1 %v1022_v26 }
  0x41   : > { %1093 = vmatpush3.bf16.msra.mxu1 %v1014_v27 }
  0xf7   : > { %v1270_v38 = vpop.f32.mrb[0].mxu0 }
  0xf8   : > { %v440_v43 = vmul.f32 %v1255_v30, %v1270_v38  ;;  %v1282_v44 = vmul.f32 %v1258_v31, %v1270_v38  ;;  %v1284_v45 = vpop.f32.mrb[1].mxu0  ;;  %v432_v48 = vmul.f32 %v1250_v28, %v1270_v38  ;;  %v466_v49 = vrot.slane %v1270_v38, 3 }
  0xf9   : > { %v482_v50 = vmul.f32 %v1261_v32, %v1270_v38  ;;  %v1295_v51 = vmul.f32 %v1264_v33, %v1270_v38  ;;  %v476_v53 = vmul.f32 %v472_v34, %v1270_v38  ;;  %v441_v54 = vmul.f32 %v437_v35, %v1284_v45 }
  0xfa   : > { %v444_v52 = vrot.slane %v440_v43, 1  ;;  %v455_v55 = vmul.f32 %v451_v36, %v1284_v45  ;;  %v458_v56 = vrot.slane %v1282_v44, 2  ;;  %v433_v59 = vmul.f32 %v1252_v29, %v1284_v45 }
  0xfb   : > { %v486_v57 = vrot.slane %v482_v50, 1  ;;  %v500_v58 = vrot.slane %v1295_v51, 2  ;;  %v1304_v60 = vpop.f32.mrb[2].mxu0  ;;  %v445_v61 = vrot.slane %v441_v54, 1  ;;  %v467_v62 = vrot.slane %v1284_v45, 3 }
  0xfc   : > { %v477_v63 = vmul.f32 %v473_v37, %v1284_v45  ;;  %v483_v0 = vmul.f32 %v1273_v39, %v1284_v45  ;;  %v421_v1 = vpop.f32.mrb[3].mxu0  ;;  %v448_v2 = vadd.f32 %v444_v52, %v432_v48  ;;  %v459_v3 = vrot.slane %v455_v55, 2 }
  0xfd   : > { %v497_v4 = vmul.f32 %v493_v40, %v1284_v45  ;;  %v1313_v5 = vmul.f32 %v1255_v30, %v1304_v60  ;;  %v490_v6 = vadd.f32 %v486_v57, %v476_v53  ;;  %v508_v8 = vmul.f32 %v1250_v28, %v1304_v60 }
  0xfe   : > { %v487_v7 = vrot.slane %v483_v0, 1  ;;  %v1319_v9 = vmul.f32 %v1258_v31, %v1304_v60  ;;  %v449_v10 = vadd.f32 %v445_v61, %v433_v59  ;;  %v1323_v12 = vmul.f32 %v1261_v32, %v1304_v60 }
  0xff   : > { %v501_v11 = vrot.slane %v497_v4, 2  ;;  %v1327_v13 = vmul.f32 %v1264_v33, %v1304_v60  ;;  %v1329_v14 = vpop.f32.mrb[4].mxu0  ;;  %v514_v16 = vrot.slane %v1313_v5, 1  ;;  %v511_v17 = vmul.f32 %v437_v35, %v421_v1 }
 0x100   : > { %v491_v15 = vadd.f32 %v487_v7, %v477_v63  ;;  %v521_v18 = vmul.f32 %v451_v36, %v421_v1  ;;  %v427_v19 = vpop.f32.mrb[5].mxu0  ;;  %v524_v20 = vrot.slane %v1319_v9, 2  ;;  %v509_v22 = vmul.f32 %v1252_v29, %v421_v1 }
 0x101   : > { %v544_v21 = vrot.slane %v1327_v13, 1  ;;  %v541_v23 = vmul.f32 %v493_v40, %v421_v1  ;;  %v515_v24 = vrot.slane %v511_v17, 1  ;;  %v539_v25 = vmul.f32 %v1273_v39, %v421_v1 }
 0x102   : > { %v569_v26 = vmul.f32 %v451_v36, %v427_v19  ;;  %v583_v27 = vmul.f32 %v579_v41, %v427_v19  ;;  %v525_v34 = vrot.slane %v521_v18, 2  ;;  %v567_v37 = vmul.f32 %v437_v35, %v427_v19 }
 0x103   : > { %v603_v43 = vmul.f32 %v493_v40, %v427_v19  ;;  %v505_v45 = vadd.f32 %v501_v11, %v491_v15  ;;  %v519_v50 = vadd.f32 %v515_v24, %v509_v22  ;;  %v545_v52 = vrot.slane %v541_v23, 1 }
 0x104   : > { %v573_v48 = vrot.slane %v569_v26, 1  ;;  %v555_v53 = vmul.f32 %v551_v42, %v421_v1  ;;  %v463_v54 = vadd.f32 %v459_v3, %v449_v10  ;;  %v533_v57 = vrot.slane %v421_v1, 3 }
 0x105   : > { %v507_v55 = vadd.f32 %v505_v45, %v467_v62  ;;  %v587_v59 = vrot.slane %v583_v27, 2  ;;  %v529_v61 = vadd.f32 %v525_v34, %v519_v50  ;;  %v549_v63 = vadd.f32 %v545_v52, %v539_v25 }
 0x106   : > { %v559_v36 = vrot.slane %v555_v53, 2  ;;  %v577_v41 = vadd.f32 %v573_v48, %v567_v37  ;;  %v601_v35 = vmul.f32 %v1273_v39, %v427_v19  ;;  %v607_v40 = vrot.slane %v603_v43, 1 }
 0x107   : > { %v613_v0 = vmul.f32 %v551_v42, %v427_v19  ;;  %v627_v4 = vrot.slane %v507_v55, 3  ;;  %v537_v5 = vadd.f32 %v533_v57, %v529_v61  ;;  %v595_v11 = vrot.slane %v427_v19, 3 }
 0x108   : > { %v563_v7 = vadd.f32 %v559_v36, %v549_v63  ;;  %v591_v9 = vadd.f32 %v587_v59, %v577_v41  ;;  %v471_v3 = vadd.f32 %v467_v62, %v463_v54  ;;  %v611_v10 = vadd.f32 %v607_v40, %v601_v35 }
 0x109   : > { %v617_v1 = vrot.slane %v613_v0, 2  ;;  %v504_v13 = vadd.f32 %v500_v58, %v490_v6  ;;  %v633_v18 = vrot.slane %v537_v5, 6  ;;  %v462_v39 = vadd.f32 %v458_v56, %v448_v2 }
 0x10a   : > { %v565_v15 = vadd.f32 %v563_v7, %v533_v57  ;;  %v599_v17 = vadd.f32 %v595_v11, %v591_v9  ;;  %v656_v29 = vsel %vm654_vm1, %v471_v3, %v627_v4  ;;  %v518_v23 = vadd.f32 %v514_v16, %v508_v8 }
 0x10b   : > { %v621_v22 = vadd.f32 %v617_v1, %v611_v10  ;;  %v506_v42 = vadd.f32 %v504_v13, %v466_v49  ;;  %v659_v24 = vsel %vm657_vm2, %v656_v29, %v633_v18  ;;  %v532_v51 = vrot.slane %v1304_v60, 3 }
 0x10c   : > { %v639_v19 = vrot.slane %v565_v15, 1  ;;  %v645_v62 = vrot.slane %v599_v17, 4  ;;  %v528_v6 = vadd.f32 %v524_v20, %v518_v23  ;;  %v548_v25 = vadd.f32 %v544_v21, %v1323_v12 }
 0x10d   : > { %v623_v58 = vadd.f32 %v621_v22, %v595_v11  ;;  %v554_v44 = vmul.f32 %v550_v46, %v1304_v60  ;;  %v470_v2 = vadd.f32 %v466_v49, %v462_v39  ;;  %v568_v8 = vmul.f32 %v1258_v31, %v1329_v14 }
 0x10e   : > { %v662_v56 = vsel %vm660_vm3, %v659_v24, %v639_v19  ;;  %v582_v16 = vmul.f32 %v578_v47, %v1329_v14  ;;  %v536_v12 = vadd.f32 %v532_v51, %v528_v6  ;;  %v566_v60 = vmul.f32 %v1255_v30, %v1329_v14 }
 0x10f   : > { %v651_v26 = vrot.slane %v623_v58, 7  ;;  %v665_v20 = vsel %vm663_vm4, %v662_v56, %v645_v62  ;;  %v558_v21 = vrot.slane %v554_v44, 2  ;;  %v572_v27 = vrot.slane %v568_v8, 1 }
 0x110   : > { %v586_v34 = vrot.slane %v582_v16, 2  ;;  %v602_v38 = vmul.f32 %v1264_v33, %v1329_v14  ;;  %v612_v47 = vmul.f32 %v550_v46, %v1329_v14  ;;  %v626_v37 = vrot.slane %v506_v42, 3 }
 0x111   : > { %v668_v49 = vsel %vm666_vm5, %v665_v20, %v651_v26  ;;  %v562_v31 = vadd.f32 %v558_v21, %v548_v25  ;;  %v576_v43 = vadd.f32 %v572_v27, %v566_v60  ;;  %v600_v45 = vmul.f32 %v1261_v32, %v1329_v14 }
 0x112   : > { %799 = vmatprep.mubr.f32.mxu1 %v668_v49  ;;  %v606_v30 = vrot.slane %v602_v38, 1  ;;  %v632_v48 = vrot.slane %v536_v12, 6  ;;  %v594_v52 = vrot.slane %v1329_v14, 3  ;;  %v655_v33 = vsel %vm654_vm1, %v470_v2, %v626_v37  ;;  %670 = vst [vmem:[%s319_s8 + $0x8] sm:$0x3f] %v668_v49 }
 0x113   : > { %v564_v50 = vadd.f32 %v562_v31, %v532_v51  ;;  %v590_v53 = vadd.f32 %v586_v34, %v576_v43  ;;  %v616_v55 = vrot.slane %v612_v47, 2 }
 0x114   : > { %v610_v54 = vadd.f32 %v606_v30, %v600_v45  ;;  %v658_v28 = vsel %vm657_vm2, %v655_v33, %v632_v48 }
 0x115   : > { %v638_v46 = vrot.slane %v564_v50, 1  ;;  %v598_v57 = vadd.f32 %v594_v52, %v590_v53 }
 0x116   : > { %v620_v59 = vadd.f32 %v616_v55, %v610_v54 }
 0x117   : > { %v661_v32 = vsel %vm660_vm3, %v658_v28, %v638_v46  ;;  %v644_v63 = vrot.slane %v598_v57, 4 }
 0x118   : > { %v622_v61 = vadd.f32 %v620_v59, %v594_v52 }
 0x119   : > { %v664_v36 = vsel %vm663_vm4, %v661_v32, %v644_v63 }
 0x11a   : > { %v650_v14 = vrot.slane %v622_v61, 7 }
 0x11c   : > { %v667_v41 = vsel %vm666_vm5, %v664_v36, %v650_v14 }
 0x11d   : > { %669 = vst [vmem:[%s319_s8] sm:$0x3f] %v667_v41  ;;  %800 = vmatmul.mubr.f32.vlgmr.msra.gmra.mrb[0].mxu1 %v667_v41 }
 0x1f0   : > { %v1055_v35 = vpop.f32.mrb[0].mxu1 }
 0x1f1   : > { %v1056_v40 = vpop.f32.mrb[1].mxu1 }
 0x1f2   : > { %v1057_v0 = vadd.f32 %v1056_v40, %v1055_v35 }
 0x1f4   : > { %806 = vst.msk [vmem:[%s324_s12] sm:$0x3f] %vm805_vm6, %v1057_v0 }
 0x1f5 PF: > { %p13_p11 = scmp.ge.s32.totalorder %s1196_s22, 4   ;;  %s1405_s18 = smov %s1144_s19 }
 0x1f6   : > { %s1406_s19 = smov %s1203_s25  ;;  %s1407_s20 = smov %s1196_s22 }
 0x1f7   :  { %15 = sbr.rel (!%p13_p11) target bundleno = 2 (0x2), region = 127 }

</bundles_post_ra>
